<compile_context>
chip_gen: v7x
topology: tpu7x:2x2x1
jax: 0.10.0
libtpu: 0.0.40
codegen_flags: <defaults>
</compile_context>

<pallas_src>
import numpy as np
import jax
import jax.numpy as jnp
from jax import lax
from jax.experimental import pallas as pl
from jax.experimental.pallas import tpu as pltpu

NUM_CLASSES = 10  # stand-in for len(class_map) (CIFAR-10 tutorial)


def _round_up(x, m):
    return (x + m - 1) // m * m


def _balanced_tile(m, max_tile):
    """Tile (multiple of 8, <= ~max_tile) that covers m with minimal padding."""
    n_tiles = -(-m // max_tile)
    tile = _round_up(-(-m // n_tiles), 8)
    return tile, tile * n_tiles, n_tiles


def _vmem_limit(per_step_bytes):
    # Scoped-VMEM request sized to the per-grid-step working set, clamped to a
    # range safe on v5e/v6e/v7x.
    return int(min(max(2 * per_step_bytes, 16 * 1024 * 1024), 64 * 1024 * 1024))


# ----------------------------- Pallas kernels -----------------------------

def conv_relu_pool_kernel(patches_ref, w_ref, b_ref, out_ref):
    """Fused conv(as matmul) + 2x2 max-pool + bias + ReLU for one row tile.

    patches_ref: (4, TILE_M, K)  pool-position-grouped im2col rows (K unpadded)
    w_ref:       (K, Cp)         weight, output channels zero-padded to 128
    b_ref:       (1, Cp)
    out_ref:     (TILE_M, Cout)  pooled rows (n,ph,pw), channels in lanes
    """
    cout = out_ref.shape[1]
    w = w_ref[...]
    # Max-pool over the 4 pool positions on the raw matmul results; bias + ReLU
    # applied once afterwards (max and +bias commute, ReLU is monotone).
    res = jnp.dot(patches_ref[0], w, preferred_element_type=jnp.float32)
    for j in range(1, 4):  # static unroll over the 2x2 pooling window
        res = jnp.maximum(
            res, jnp.dot(patches_ref[j], w, preferred_element_type=jnp.float32))
    res = jnp.maximum(res + b_ref[...], 0.0)
    out_ref[...] = res[:, :cout]


def mlp_kernel(x_ref, w1_ref, b1_ref, w2_ref, b2_ref, w3_ref, b3_ref, out_ref):
    """fc1 -> ReLU -> fc2 -> ReLU -> fc3 for one tile of batch rows."""
    h = jnp.dot(x_ref[...], w1_ref[...], preferred_element_type=jnp.float32) + b1_ref[...]
    h = jnp.maximum(h, 0.0)
    h = jnp.dot(h, w2_ref[...], preferred_element_type=jnp.float32) + b2_ref[...]
    h = jnp.maximum(h, 0.0)
    out_ref[...] = jnp.dot(h, w3_ref[...], preferred_element_type=jnp.float32) + b3_ref[...]


# ----------------------------- glue (plain JAX) -----------------------------

def im2col_pooled_nhwc(x, k):
    """x: (N, H, W, C) NHWC -> patches (4, N*PH*PW, k*k*C) grouped by 2x2 pool
    position. Patch features ordered (kh, kw, c); rows ordered (n, ph, pw)."""
    N, H, W, C = x.shape
    OH, OW = H - k + 1, W - k + 1
    PH, PW = OH // 2, OW // 2
    cols = jnp.stack(
        [x[:, kh:kh + OH, kw:kw + OW, :] for kh in range(k) for kw in range(k)],
        axis=3)                                      # (N, OH, OW, k*k, C)
    cols = cols.reshape(N, OH, OW, k * k * C)
    groups = [cols[:, dh::2, dw::2, :].reshape(N * PH * PW, k * k * C)
              for dh in range(2) for dw in range(2)]
    return jnp.stack(groups, axis=0), (N, PH, PW)    # (4, M, K)


def conv_layer(x_nhwc, w_p, b_p, *, cout, k=5, tile_m=256):
    """Conv2d(k, valid) + ReLU + MaxPool2d(2,2) on an NHWC activation.

    x_nhwc: (N, H, W, Cin); w_p: (K, Cp) pre-transposed/padded; b_p: (1, Cp).
    Returns the pooled activation in NHWC: (N, PH, PW, cout).
    """
    patches, (N, PH, PW) = im2col_pooled_nhwc(x_nhwc, k)
    _, M, K = patches.shape
    Cp = w_p.shape[1]

    TILE_M, Mp, n_tiles = _balanced_tile(M, tile_m)
    patches = jnp.pad(patches, ((0, 0), (0, Mp - M), (0, 0)))   # K left unpadded

    itemsize = 4
    per_step = (2 * 4 * TILE_M * K        # patches block, double-buffered
                + 2 * K * Cp + 2 * Cp     # resident weight + bias
                + 2 * TILE_M * cout       # output block, double-buffered
                + 4 * TILE_M * Cp) * itemsize  # f32 intermediates

    out = pl.pallas_call(
        conv_relu_pool_kernel,
        out_shape=jax.ShapeDtypeStruct((Mp, cout), jnp.float32),
        grid=(n_tiles,),
        in_specs=[
            pl.BlockSpec((4, TILE_M, K), lambda i: (0, i, 0)),
            pl.BlockSpec((K, Cp), lambda i: (0, 0)),   # resident across grid steps
            pl.BlockSpec((1, Cp), lambda i: (0, 0)),
        ],
        out_specs=pl.BlockSpec((TILE_M, cout), lambda i: (i, 0)),
        compiler_params=pltpu.CompilerParams(
            dimension_semantics=("parallel",),          # megacore split on v7x
            vmem_limit_bytes=_vmem_limit(per_step)),
    )(patches, w_p, b_p)

    return out[:M].reshape(N, PH, PW, cout)


def mlp(x, w1, b1, w2, b2, w3, b3, *, tile_b=256):
    """fc1 -> ReLU -> fc2 -> ReLU -> fc3.  x: (N, 400); weights pre-padded (in, out)."""
    N, D = x.shape
    H1, H2, H3 = w1.shape[1], w2.shape[1], w3.shape[1]

    TILE_B, Np, n_tiles = _balanced_tile(N, tile_b)
    x_p = jnp.pad(x, ((0, Np - N), (0, 0)))             # K=400 stays unpadded in HBM

    itemsize = 4
    weight_bytes = (D * H1 + H1 + H1 * H2 + H2 + H2 * H3 + H3) * itemsize
    per_step = (2 * TILE_B * D + 2 * TILE_B * H3 + 2 * TILE_B * (H1 + H2)) * itemsize \
        + 2 * weight_bytes

    out = pl.pallas_call(
        mlp_kernel,
        out_shape=jax.ShapeDtypeStruct((Np, H3), jnp.float32),
        grid=(n_tiles,),
        in_specs=[
            pl.BlockSpec((TILE_B, D), lambda i: (i, 0)),
            pl.BlockSpec((D, H1), lambda i: (0, 0)),    # weights resident in VMEM
            pl.BlockSpec((1, H1), lambda i: (0, 0)),
            pl.BlockSpec((H1, H2), lambda i: (0, 0)),
            pl.BlockSpec((1, H2), lambda i: (0, 0)),
            pl.BlockSpec((H2, H3), lambda i: (0, 0)),
            pl.BlockSpec((1, H3), lambda i: (0, 0)),
        ],
        out_specs=pl.BlockSpec((TILE_B, H3), lambda i: (i, 0)),   # lane-dense (128)
        compiler_params=pltpu.CompilerParams(
            dimension_semantics=("parallel",),
            vmem_limit_bytes=_vmem_limit(per_step)),
    )(x_p, w1, b1, w2, b2, w3, b3)
    return out[:N]


# ----------------------------- parameter repack -----------------------------

# NHWC-flatten position (h, w, c) -> PyTorch NCHW-flatten position (c, h, w)
_h, _w, _c = np.meshgrid(np.arange(5), np.arange(5), np.arange(16), indexing="ij")
_FC1_PERM = jnp.asarray((_c * 25 + _h * 5 + _w).reshape(-1))


def prepare_params(p):
    """One-time repack of PyTorch-layout params into kernel-ready layout.

    Hoisted out of the jitted forward: OIHW -> (K, Cout) transposes, lane
    padding to 128, bias reshapes, and the fc1 row permutation (so the NHWC
    flatten of the pooled conv2 activation matches PyTorch's NCHW flatten).
    """
    def conv_wb(w, b):
        cout, cin, k, _ = w.shape
        K = k * k * cin
        cp = _round_up(cout, 128)
        w_mat = jnp.transpose(w, (2, 3, 1, 0)).reshape(K, cout)  # (kh, kw, ci) x co
        return (jnp.pad(w_mat, ((0, 0), (0, cp - cout))),
                jnp.pad(b, (0, cp - cout)).reshape(1, cp))

    def fc_wb(w, b, rows_pad):
        din, dout = w.shape
        dop = _round_up(dout, 128)
        return (jnp.pad(w, ((0, rows_pad - din), (0, dop - dout))),
                jnp.pad(b, (0, dop - dout)).reshape(1, dop))

    c1w, c1b = conv_wb(p["conv1_w"], p["conv1_b"])
    c2w, c2b = conv_wb(p["conv2_w"], p["conv2_b"])
    fc1w = jnp.take(p["fc1_w"], _FC1_PERM, axis=0)                 # (400, 120) permuted
    f1w, f1b = fc_wb(fc1w, p["fc1_b"], rows_pad=fc1w.shape[0])     # keep K=400 unpadded
    f2w, f2b = fc_wb(p["fc2_w"], p["fc2_b"], rows_pad=_round_up(p["fc2_w"].shape[0], 128))
    f3w, f3b = fc_wb(p["fc3_w"], p["fc3_b"], rows_pad=_round_up(p["fc3_w"].shape[0], 128))
    return {
        "conv1_w": c1w, "conv1_b": c1b,
        "conv2_w": c2w, "conv2_b": c2b,
        "fc1_w": f1w, "fc1_b": f1b,
        "fc2_w": f2w, "fc2_b": f2b,
        "fc3_w": f3w, "fc3_b": f3b,
    }


def net_forward(x, p):
    x = jnp.transpose(x, (0, 2, 3, 1))                   # NCHW -> NHWC once on raw input
    x = conv_layer(x, p["conv1_w"], p["conv1_b"], cout=6)    # (N, 14, 14, 6) NHWC pooled
    x = conv_layer(x, p["conv2_w"], p["conv2_b"], cout=16)   # (N, 5, 5, 16)  NHWC pooled
    x = x.reshape(x.shape[0], -1)                         # NHWC flatten; fc1 rows pre-permuted
    logits = mlp(x, p["fc1_w"], p["fc1_b"], p["fc2_w"], p["fc2_b"],
                 p["fc3_w"], p["fc3_b"])
    return logits[:, :NUM_CLASSES]


# ----------------------------- params & reference -----------------------------

def init_params(key):
    ks = jax.random.split(key, 10)

    def u(k, shape, fan_in):
        bound = 1.0 / jnp.sqrt(float(fan_in))
        return jax.random.uniform(k, shape, jnp.float32, -bound, bound)

    return {
        "conv1_w": u(ks[0], (6, 3, 5, 5), 3 * 25),
        "conv1_b": u(ks[1], (6,), 3 * 25),
        "conv2_w": u(ks[2], (16, 6, 5, 5), 6 * 25),
        "conv2_b": u(ks[3], (16,), 6 * 25),
        "fc1_w": u(ks[4], (16 * 5 * 5, 120), 16 * 5 * 5),
        "fc1_b": u(ks[5], (120,), 16 * 5 * 5),
        "fc2_w": u(ks[6], (120, 84), 120),
        "fc2_b": u(ks[7], (84,), 120),
        "fc3_w": u(ks[8], (84, NUM_CLASSES), 84),
        "fc3_b": u(ks[9], (NUM_CLASSES,), 84),
    }


def reference_forward(x, p):
    dn = ("NCHW", "OIHW", "NCHW")

    def conv(x, w, b):
        y = lax.conv_general_dilated(x, w, (1, 1), "VALID", dimension_numbers=dn)
        return y + b.reshape(1, -1, 1, 1)

    def pool(x):
        return lax.reduce_window(x, -jnp.inf, lax.max, (1, 1, 2, 2), (1, 1, 2, 2), "VALID")

    x = pool(jax.nn.relu(conv(x, p["conv1_w"], p["conv1_b"])))
    x = pool(jax.nn.relu(conv(x, p["conv2_w"], p["conv2_b"])))
    x = x.reshape(x.shape[0], -1)
    x = jax.nn.relu(x @ p["fc1_w"] + p["fc1_b"])
    x = jax.nn.relu(x @ p["fc2_w"] + p["fc2_b"])
    return x @ p["fc3_w"] + p["fc3_b"]


if __name__ == "__main__":
    key = jax.random.PRNGKey(0)
    pkey, xkey = jax.random.split(key)
    params = init_params(pkey)
    prepped = prepare_params(params)          # one-time weight repack (outside the jit)
    # 32x32 spatial input is required by fc1 = 16*5*5 (CIFAR-sized images).
    x = jax.random.normal(xkey, (2, 3, 32, 32), jnp.float32)

    out = jax.jit(net_forward)(x, prepped)
    out = jax.block_until_ready(out)

    ref = reference_forward(x, params)
    assert out.shape == (2, NUM_CLASSES), out.shape
    assert jnp.allclose(out, ref, atol=1e-3, rtol=1e-3), float(jnp.max(jnp.abs(out - ref)))
    print("KERNEL_OK")
</pallas_src>

<mosaic_0001>
module attributes {stable_mosaic.version = 11 : i64} {
  func.func @conv_relu_pool_kernel(%arg0: i32, %arg1: memref<4x200x75xf32, #tpu.memory_space<vmem>>, %arg2: memref<75x128xf32, #tpu.memory_space<vmem>>, %arg3: memref<1x128xf32, #tpu.memory_space<vmem>>, %arg4: memref<200x6xf32, #tpu.memory_space<vmem>>) attributes {dimension_semantics = [#tpu.dimension_semantics<parallel>], iteration_bounds = array<i64: 2>, scalar_prefetch = 0 : i64, scratch_operands = 0 : i64, tpu.core_type = #tpu.core_type<tc>, window_params = [{transform_indices = @transform_0, window_bounds = array<i64: 4, 200, 75>}, {pipeline_mode = #tpu.pipeline_mode<synchronous>, transform_indices = @transform_1, window_bounds = array<i64: 75, 128>}, {pipeline_mode = #tpu.pipeline_mode<synchronous>, transform_indices = @transform_2, window_bounds = array<i64: 1, 128>}, {transform_indices = @transform_3, window_bounds = array<i64: 200, 6>}]} {
    %c0 = arith.constant 0 : index
    %c0_0 = arith.constant 0 : index
    %0 = vector.load %arg2[%c0, %c0_0] : memref<75x128xf32, #tpu.memory_space<vmem>>, vector<75x128xf32>
    %c0_1 = arith.constant 0 : index
    %c0_2 = arith.constant 0 : index
    %c0_3 = arith.constant 0 : index
    %1 = vector.load %arg1[%c0_1, %c0_2, %c0_3] : memref<4x200x75xf32, #tpu.memory_space<vmem>>, vector<1x200x75xf32>
    %2 = vector.shape_cast %1 : vector<1x200x75xf32> to vector<200x75xf32>
    %cst = arith.constant dense<0.000000e+00> : vector<200x128xf32>
    %3 = tpu.matmul %2, %0, %cst {dimension_numbers = #tpu.dot_dimension_numbers<[1], [0], [0], [1], [0, 0, 1, 1], [], []>} : vector<200x75xf32>, vector<75x128xf32>, vector<200x128xf32> -> vector<200x128xf32>
    %c1 = arith.constant 1 : index
    %c0_4 = arith.constant 0 : index
    %c0_5 = arith.constant 0 : index
    %4 = vector.load %arg1[%c1, %c0_4, %c0_5] : memref<4x200x75xf32, #tpu.memory_space<vmem>>, vector<1x200x75xf32>
    %5 = vector.shape_cast %4 : vector<1x200x75xf32> to vector<200x75xf32>
    %cst_6 = arith.constant dense<0.000000e+00> : vector<200x128xf32>
    %6 = tpu.matmul %5, %0, %cst_6 {dimension_numbers = #tpu.dot_dimension_numbers<[1], [0], [0], [1], [0, 0, 1, 1], [], []>} : vector<200x75xf32>, vector<75x128xf32>, vector<200x128xf32> -> vector<200x128xf32>
    %7 = arith.maximumf %3, %6 : vector<200x128xf32>
    %c2 = arith.constant 2 : index
    %c0_7 = arith.constant 0 : index
    %c0_8 = arith.constant 0 : index
    %8 = vector.load %arg1[%c2, %c0_7, %c0_8] : memref<4x200x75xf32, #tpu.memory_space<vmem>>, vector<1x200x75xf32>
    %9 = vector.shape_cast %8 : vector<1x200x75xf32> to vector<200x75xf32>
    %cst_9 = arith.constant dense<0.000000e+00> : vector<200x128xf32>
    %10 = tpu.matmul %9, %0, %cst_9 {dimension_numbers = #tpu.dot_dimension_numbers<[1], [0], [0], [1], [0, 0, 1, 1], [], []>} : vector<200x75xf32>, vector<75x128xf32>, vector<200x128xf32> -> vector<200x128xf32>
    %11 = arith.maximumf %7, %10 : vector<200x128xf32>
    %c3 = arith.constant 3 : index
    %c0_10 = arith.constant 0 : index
    %c0_11 = arith.constant 0 : index
    %12 = vector.load %arg1[%c3, %c0_10, %c0_11] : memref<4x200x75xf32, #tpu.memory_space<vmem>>, vector<1x200x75xf32>
    %13 = vector.shape_cast %12 : vector<1x200x75xf32> to vector<200x75xf32>
    %cst_12 = arith.constant dense<0.000000e+00> : vector<200x128xf32>
    %14 = tpu.matmul %13, %0, %cst_12 {dimension_numbers = #tpu.dot_dimension_numbers<[1], [0], [0], [1], [0, 0, 1, 1], [], []>} : vector<200x75xf32>, vector<75x128xf32>, vector<200x128xf32> -> vector<200x128xf32>
    %15 = arith.maximumf %11, %14 : vector<200x128xf32>
    %c0_13 = arith.constant 0 : index
    %c0_14 = arith.constant 0 : index
    %16 = vector.load %arg3[%c0_13, %c0_14] : memref<1x128xf32, #tpu.memory_space<vmem>>, vector<1x128xf32>
    %17 = vector.broadcast %16 : vector<1x128xf32> to vector<200x128xf32>
    %18 = arith.addf %15, %17 : vector<200x128xf32>
    %cst_15 = arith.constant 0.000000e+00 : f32
    %19 = vector.broadcast %cst_15 : f32 to vector<200x128xf32>
    %20 = arith.maximumf %18, %19 : vector<200x128xf32>
    %21 = vector.extract_strided_slice %20 {offsets = [0, 0], sizes = [200, 6], strides = [1, 1]} : vector<200x128xf32> to vector<200x6xf32>
    %c0_16 = arith.constant 0 : index
    %c0_17 = arith.constant 0 : index
    %22 = vector.load %arg4[%c0_16, %c0_17] : memref<200x6xf32, #tpu.memory_space<vmem>>, vector<200x6xf32>
    tpu.vector_store %arg4[%c0_16, %c0_17], %21 {strides = array<i32>} : memref<200x6xf32, #tpu.memory_space<vmem>>, vector<200x6xf32>,
    return
  }
  func.func @transform_0(%arg0: i32) -> (i32, i32, i32) {
    %c0_i32 = arith.constant 0 : i32
    %c0_i32_0 = arith.constant 0 : i32
    %c0_i32_1 = arith.constant 0 : i32
    return %c0_i32, %arg0, %c0_i32_0 : i32, i32, i32
  }
  func.func @transform_1(%arg0: i32) -> (i32, i32) {
    %c0_i32 = arith.constant 0 : i32
    %c0_i32_0 = arith.constant 0 : i32
    %c0_i32_1 = arith.constant 0 : i32
    return %c0_i32, %c0_i32_0 : i32, i32
  }
  func.func @transform_2(%arg0: i32) -> (i32, i32) {
    %c0_i32 = arith.constant 0 : i32
    %c0_i32_0 = arith.constant 0 : i32
    %c0_i32_1 = arith.constant 0 : i32
    return %c0_i32, %c0_i32_0 : i32, i32
  }
  func.func @transform_3(%arg0: i32) -> (i32, i32) {
    %c0_i32 = arith.constant 0 : i32
    %c0_i32_0 = arith.constant 0 : i32
    return %arg0, %c0_i32 : i32, i32
  }
}

module attributes {stable_mosaic.version = 11 : i64} {
  func.func @mlp_kernel(%arg0: i32, %arg1: memref<8x400xf32, #tpu.memory_space<vmem>>, %arg2: memref<400x128xf32, #tpu.memory_space<vmem>>, %arg3: memref<1x128xf32, #tpu.memory_space<vmem>>, %arg4: memref<128x128xf32, #tpu.memory_space<vmem>>, %arg5: memref<1x128xf32, #tpu.memory_space<vmem>>, %arg6: memref<128x128xf32, #tpu.memory_space<vmem>>, %arg7: memref<1x128xf32, #tpu.memory_space<vmem>>, %arg8: memref<8x128xf32, #tpu.memory_space<vmem>>) attributes {dimension_semantics = [#tpu.dimension_semantics<parallel>], iteration_bounds = array<i64: 1>, scalar_prefetch = 0 : i64, scratch_operands = 0 : i64, tpu.core_type = #tpu.core_type<tc>, window_params = [{transform_indices = @transform_0, window_bounds = array<i64: 8, 400>}, {pipeline_mode = #tpu.pipeline_mode<synchronous>, transform_indices = @transform_1, window_bounds = array<i64: 400, 128>}, {pipeline_mode = #tpu.pipeline_mode<synchronous>, transform_indices = @transform_2, window_bounds = array<i64: 1, 128>}, {pipeline_mode = #tpu.pipeline_mode<synchronous>, transform_indices = @transform_3, window_bounds = array<i64: 128, 128>}, {pipeline_mode = #tpu.pipeline_mode<synchronous>, transform_indices = @transform_4, window_bounds = array<i64: 1, 128>}, {pipeline_mode = #tpu.pipeline_mode<synchronous>, transform_indices = @transform_5, window_bounds = array<i64: 128, 128>}, {pipeline_mode = #tpu.pipeline_mode<synchronous>, transform_indices = @transform_6, window_bounds = array<i64: 1, 128>}, {transform_indices = @transform_7, window_bounds = array<i64: 8, 128>}]} {
    %c0 = arith.constant 0 : index
    %c0_0 = arith.constant 0 : index
    %0 = vector.load %arg1[%c0, %c0_0] : memref<8x400xf32, #tpu.memory_space<vmem>>, vector<8x400xf32>
    %c0_1 = arith.constant 0 : index
    %c0_2 = arith.constant 0 : index
    %1 = vector.load %arg2[%c0_1, %c0_2] : memref<400x128xf32, #tpu.memory_space<vmem>>, vector<400x128xf32>
    %cst = arith.constant dense<0.000000e+00> : vector<8x128xf32>
    %2 = tpu.matmul %0, %1, %cst {dimension_numbers = #tpu.dot_dimension_numbers<[1], [0], [0], [1], [0, 0, 1, 1], [], []>} : vector<8x400xf32>, vector<400x128xf32>, vector<8x128xf32> -> vector<8x128xf32>
    %c0_3 = arith.constant 0 : index
    %c0_4 = arith.constant 0 : index
    %3 = vector.load %arg3[%c0_3, %c0_4] : memref<1x128xf32, #tpu.memory_space<vmem>>, vector<1x128xf32>
    %4 = vector.broadcast %3 : vector<1x128xf32> to vector<8x128xf32>
    %5 = arith.addf %2, %4 : vector<8x128xf32>
    %cst_5 = arith.constant 0.000000e+00 : f32
    %6 = vector.broadcast %cst_5 : f32 to vector<8x128xf32>
    %7 = arith.maximumf %5, %6 : vector<8x128xf32>
    %c0_6 = arith.constant 0 : index
    %c0_7 = arith.constant 0 : index
    %8 = vector.load %arg4[%c0_6, %c0_7] : memref<128x128xf32, #tpu.memory_space<vmem>>, vector<128x128xf32>
    %cst_8 = arith.constant dense<0.000000e+00> : vector<8x128xf32>
    %9 = tpu.matmul %7, %8, %cst_8 {dimension_numbers = #tpu.dot_dimension_numbers<[1], [0], [0], [1], [0, 0, 1, 1], [], []>} : vector<8x128xf32>, vector<128x128xf32>, vector<8x128xf32> -> vector<8x128xf32>
    %c0_9 = arith.constant 0 : index
    %c0_10 = arith.constant 0 : index
    %10 = vector.load %arg5[%c0_9, %c0_10] : memref<1x128xf32, #tpu.memory_space<vmem>>, vector<1x128xf32>
    %11 = vector.broadcast %10 : vector<1x128xf32> to vector<8x128xf32>
    %12 = arith.addf %9, %11 : vector<8x128xf32>
    %cst_11 = arith.constant 0.000000e+00 : f32
    %13 = vector.broadcast %cst_11 : f32 to vector<8x128xf32>
    %14 = arith.maximumf %12, %13 : vector<8x128xf32>
    %c0_12 = arith.constant 0 : index
    %c0_13 = arith.constant 0 : index
    %15 = vector.load %arg6[%c0_12, %c0_13] : memref<128x128xf32, #tpu.memory_space<vmem>>, vector<128x128xf32>
    %cst_14 = arith.constant dense<0.000000e+00> : vector<8x128xf32>
    %16 = tpu.matmul %14, %15, %cst_14 {dimension_numbers = #tpu.dot_dimension_numbers<[1], [0], [0], [1], [0, 0, 1, 1], [], []>} : vector<8x128xf32>, vector<128x128xf32>, vector<8x128xf32> -> vector<8x128xf32>
    %c0_15 = arith.constant 0 : index
    %c0_16 = arith.constant 0 : index
    %17 = vector.load %arg7[%c0_15, %c0_16] : memref<1x128xf32, #tpu.memory_space<vmem>>, vector<1x128xf32>
    %18 = vector.broadcast %17 : vector<1x128xf32> to vector<8x128xf32>
    %19 = arith.addf %16, %18 : vector<8x128xf32>
    %c0_17 = arith.constant 0 : index
    %c0_18 = arith.constant 0 : index
    %20 = vector.load %arg8[%c0_17, %c0_18] : memref<8x128xf32, #tpu.memory_space<vmem>>, vector<8x128xf32>
    tpu.vector_store %arg8[%c0_17, %c0_18], %19 {strides = array<i32>} : memref<8x128xf32, #tpu.memory_space<vmem>>, vector<8x128xf32>,
    return
  }
  func.func @transform_0(%arg0: i32) -> (i32, i32) {
    %c0_i32 = arith.constant 0 : i32
    %c0_i32_0 = arith.constant 0 : i32
    return %arg0, %c0_i32 : i32, i32
  }
  func.func @transform_1(%arg0: i32) -> (i32, i32) {
    %c0_i32 = arith.constant 0 : i32
    %c0_i32_0 = arith.constant 0 : i32
    %c0_i32_1 = arith.constant 0 : i32
    return %c0_i32, %c0_i32_0 : i32, i32
  }
  func.func @transform_2(%arg0: i32) -> (i32, i32) {
    %c0_i32 = arith.constant 0 : i32
    %c0_i32_0 = arith.constant 0 : i32
    %c0_i32_1 = arith.constant 0 : i32
    return %c0_i32, %c0_i32_0 : i32, i32
  }
  func.func @transform_3(%arg0: i32) -> (i32, i32) {
    %c0_i32 = arith.constant 0 : i32
    %c0_i32_0 = arith.constant 0 : i32
    %c0_i32_1 = arith.constant 0 : i32
    return %c0_i32, %c0_i32_0 : i32, i32
  }
  func.func @transform_4(%arg0: i32) -> (i32, i32) {
    %c0_i32 = arith.constant 0 : i32
    %c0_i32_0 = arith.constant 0 : i32
    %c0_i32_1 = arith.constant 0 : i32
    return %c0_i32, %c0_i32_0 : i32, i32
  }
  func.func @transform_5(%arg0: i32) -> (i32, i32) {
    %c0_i32 = arith.constant 0 : i32
    %c0_i32_0 = arith.constant 0 : i32
    %c0_i32_1 = arith.constant 0 : i32
    return %c0_i32, %c0_i32_0 : i32, i32
  }
  func.func @transform_6(%arg0: i32) -> (i32, i32) {
    %c0_i32 = arith.constant 0 : i32
    %c0_i32_0 = arith.constant 0 : i32
    %c0_i32_1 = arith.constant 0 : i32
    return %c0_i32, %c0_i32_0 : i32, i32
  }
  func.func @transform_7(%arg0: i32) -> (i32, i32) {
    %c0_i32 = arith.constant 0 : i32
    %c0_i32_0 = arith.constant 0 : i32
    return %arg0, %c0_i32 : i32, i32
  }
}

module attributes {stable_mosaic.version = 11 : i64} {
  func.func @conv_relu_pool_kernel(%arg0: i32, %arg1: memref<4x56x150xf32, #tpu.memory_space<vmem>>, %arg2: memref<150x128xf32, #tpu.memory_space<vmem>>, %arg3: memref<1x128xf32, #tpu.memory_space<vmem>>, %arg4: memref<56x16xf32, #tpu.memory_space<vmem>>) attributes {dimension_semantics = [#tpu.dimension_semantics<parallel>], iteration_bounds = array<i64: 1>, scalar_prefetch = 0 : i64, scratch_operands = 0 : i64, tpu.core_type = #tpu.core_type<tc>, window_params = [{transform_indices = @transform_0, window_bounds = array<i64: 4, 56, 150>}, {pipeline_mode = #tpu.pipeline_mode<synchronous>, transform_indices = @transform_1, window_bounds = array<i64: 150, 128>}, {pipeline_mode = #tpu.pipeline_mode<synchronous>, transform_indices = @transform_2, window_bounds = array<i64: 1, 128>}, {transform_indices = @transform_3, window_bounds = array<i64: 56, 16>}]} {
    %c0 = arith.constant 0 : index
    %c0_0 = arith.constant 0 : index
    %0 = vector.load %arg2[%c0, %c0_0] : memref<150x128xf32, #tpu.memory_space<vmem>>, vector<150x128xf32>
    %c0_1 = arith.constant 0 : index
    %c0_2 = arith.constant 0 : index
    %c0_3 = arith.constant 0 : index
    %1 = vector.load %arg1[%c0_1, %c0_2, %c0_3] : memref<4x56x150xf32, #tpu.memory_space<vmem>>, vector<1x56x150xf32>
    %2 = vector.shape_cast %1 : vector<1x56x150xf32> to vector<56x150xf32>
    %cst = arith.constant dense<0.000000e+00> : vector<56x128xf32>
    %3 = tpu.matmul %2, %0, %cst {dimension_numbers = #tpu.dot_dimension_numbers<[1], [0], [0], [1], [0, 0, 1, 1], [], []>} : vector<56x150xf32>, vector<150x128xf32>, vector<56x128xf32> -> vector<56x128xf32>
    %c1 = arith.constant 1 : index
    %c0_4 = arith.constant 0 : index
    %c0_5 = arith.constant 0 : index
    %4 = vector.load %arg1[%c1, %c0_4, %c0_5] : memref<4x56x150xf32, #tpu.memory_space<vmem>>, vector<1x56x150xf32>
    %5 = vector.shape_cast %4 : vector<1x56x150xf32> to vector<56x150xf32>
    %cst_6 = arith.constant dense<0.000000e+00> : vector<56x128xf32>
    %6 = tpu.matmul %5, %0, %cst_6 {dimension_numbers = #tpu.dot_dimension_numbers<[1], [0], [0], [1], [0, 0, 1, 1], [], []>} : vector<56x150xf32>, vector<150x128xf32>, vector<56x128xf32> -> vector<56x128xf32>
    %7 = arith.maximumf %3, %6 : vector<56x128xf32>
    %c2 = arith.constant 2 : index
    %c0_7 = arith.constant 0 : index
    %c0_8 = arith.constant 0 : index
    %8 = vector.load %arg1[%c2, %c0_7, %c0_8] : memref<4x56x150xf32, #tpu.memory_space<vmem>>, vector<1x56x150xf32>
    %9 = vector.shape_cast %8 : vector<1x56x150xf32> to vector<56x150xf32>
    %cst_9 = arith.constant dense<0.000000e+00> : vector<56x128xf32>
    %10 = tpu.matmul %9, %0, %cst_9 {dimension_numbers = #tpu.dot_dimension_numbers<[1], [0], [0], [1], [0, 0, 1, 1], [], []>} : vector<56x150xf32>, vector<150x128xf32>, vector<56x128xf32> -> vector<56x128xf32>
    %11 = arith.maximumf %7, %10 : vector<56x128xf32>
    %c3 = arith.constant 3 : index
    %c0_10 = arith.constant 0 : index
    %c0_11 = arith.constant 0 : index
    %12 = vector.load %arg1[%c3, %c0_10, %c0_11] : memref<4x56x150xf32, #tpu.memory_space<vmem>>, vector<1x56x150xf32>
    %13 = vector.shape_cast %12 : vector<1x56x150xf32> to vector<56x150xf32>
    %cst_12 = arith.constant dense<0.000000e+00> : vector<56x128xf32>
    %14 = tpu.matmul %13, %0, %cst_12 {dimension_numbers = #tpu.dot_dimension_numbers<[1], [0], [0], [1], [0, 0, 1, 1], [], []>} : vector<56x150xf32>, vector<150x128xf32>, vector<56x128xf32> -> vector<56x128xf32>
    %15 = arith.maximumf %11, %14 : vector<56x128xf32>
    %c0_13 = arith.constant 0 : index
    %c0_14 = arith.constant 0 : index
    %16 = vector.load %arg3[%c0_13, %c0_14] : memref<1x128xf32, #tpu.memory_space<vmem>>, vector<1x128xf32>
    %17 = vector.broadcast %16 : vector<1x128xf32> to vector<56x128xf32>
    %18 = arith.addf %15, %17 : vector<56x128xf32>
    %cst_15 = arith.constant 0.000000e+00 : f32
    %19 = vector.broadcast %cst_15 : f32 to vector<56x128xf32>
    %20 = arith.maximumf %18, %19 : vector<56x128xf32>
    %21 = vector.extract_strided_slice %20 {offsets = [0, 0], sizes = [56, 16], strides = [1, 1]} : vector<56x128xf32> to vector<56x16xf32>
    %c0_16 = arith.constant 0 : index
    %c0_17 = arith.constant 0 : index
    %22 = vector.load %arg4[%c0_16, %c0_17] : memref<56x16xf32, #tpu.memory_space<vmem>>, vector<56x16xf32>
    tpu.vector_store %arg4[%c0_16, %c0_17], %21 {strides = array<i32>} : memref<56x16xf32, #tpu.memory_space<vmem>>, vector<56x16xf32>,
    return
  }
  func.func @transform_0(%arg0: i32) -> (i32, i32, i32) {
    %c0_i32 = arith.constant 0 : i32
    %c0_i32_0 = arith.constant 0 : i32
    %c0_i32_1 = arith.constant 0 : i32
    return %c0_i32, %arg0, %c0_i32_0 : i32, i32, i32
  }
  func.func @transform_1(%arg0: i32) -> (i32, i32) {
    %c0_i32 = arith.constant 0 : i32
    %c0_i32_0 = arith.constant 0 : i32
    %c0_i32_1 = arith.constant 0 : i32
    return %c0_i32, %c0_i32_0 : i32, i32
  }
  func.func @transform_2(%arg0: i32) -> (i32, i32) {
    %c0_i32 = arith.constant 0 : i32
    %c0_i32_0 = arith.constant 0 : i32
    %c0_i32_1 = arith.constant 0 : i32
    return %c0_i32, %c0_i32_0 : i32, i32
  }
  func.func @transform_3(%arg0: i32) -> (i32, i32) {
    %c0_i32 = arith.constant 0 : i32
    %c0_i32_0 = arith.constant 0 : i32
    return %arg0, %c0_i32 : i32, i32
  }
}

</mosaic_0001>

<bundles_post_ra>
// kernel: net_forward.3
= control target key start
LH: loop header
LB: loop body
LE: loop exit
PB: predicated region body
PF: predicated region fallthrough
CT: control target
= control target key end

     0   :  { %s2854_s12 = smov 0   ;;  %s2856_s13 = smov 0   ;;  %s3881_s0 = inlined_call_operand.vmem [shape: f32[4,400,75], index: 0, kind: input, shape index: {}]   ;;  %s3882_s1 = inlined_call_operand.vmem [shape: f32[75,128], index: 1, kind: input, shape index: {}]   ;;  %s3883_s2 = inlined_call_operand.vmem [shape: f32[1,128], index: 2, kind: input, shape index: {}]   ;;  %s3884_s3 = inlined_call_operand.vmem [shape: f32[400,6], index: 3, kind: output, shape index: {}]  }
   0x1   :  { %s2858_s14 = smov 0  }
   0x2 LB: > { %s2002_s15 = sadd.s32 4294967295, %s2828_s14   ;;  %s2871_s16 = sadd.s32 1, %s2828_s14   ;;  %s2828_s14 = sphi %s2858_s14, %s3912_s14   ;;  %s2824_s13 = sphi %s2856_s13, %s3911_s13   ;;  %s2820_s12 = sphi %s2854_s12, %s3910_s12  }
   0x3   : > { %s17_s17 = ssub.s32 %s2828_s14, %s2871_s16  ;;  %s20_s18 = sadd.s32 1, %s2824_s13 }
   0x4   : > { %p18_p0 = scmp.eq.s32.totalorder %s17_s17, 0  ;;  %p27_p1 = scmp.ne.s32.totalorder %s2824_s13, %s2820_s12 }
   0x5   : > { %p28_p2 = scmp.eq.s32.totalorder %s2828_s14, 0  ;;  %p2005_p4 = scmp.ge.s32.totalorder %s2828_s14, 2 }
   0x6   : > { %s2880_s19 = scalar_select %p18_p0, %s2824_s13, %s20_s18  }
   0x7   : > { %p29_p3 = por %p28_p2, %p27_p1  ;;  %127 = sbr.rel (%p2005_p4) target bundleno = 69 (0x45), region = 24 }
   0xe   : > { %130 = sbr.rel (!%p29_p3) target bundleno = 69 (0x45), region = 28  ;;  %s132_s20 = sand.u32 (%p29_p3), 1, %s2824_s13  }
   0xf   : > { %s2191_s21 = smul.u32 (%p29_p3), 200, %s2828_s14 }
  0x10   : > { %s2776_s22 = smul.u32 (%p29_p3), 800, %s132_s20 }
  0x11   : > { %s2888_s25 = scalar_lea.vmem (%p29_p3), %s3881_s0, %s2191_s21 }
  0x12   : > { %v363_v0 = vld [vmem:[%s2888_s25] sm:$0xff] (%p29_p3)  ;;  %v365_v1 = vld [vmem:[%s2888_s25 + $0x8] sm:$0xff] (%p29_p3)  ;;  %v367_v2 = vld [vmem:[%s2888_s25 + $0x10] sm:$0xff] (%p29_p3)  ;;  %s2893_s26 = scalar_lea.vmem (%p29_p3), [#allocation2], %s2776_s22 }
  0x13   : > { %364 = vst [vmem:[%s2893_s26] sm:$0xff] (%p29_p3), %v363_v0  ;;  %366 = vst [vmem:[%s2893_s26 + $0x8] sm:$0xff] (%p29_p3), %v365_v1  ;;  %v369_v3 = vld [vmem:[%s2888_s25 + $0x18] sm:$0xff] (%p29_p3)  ;;  %v371_v4 = vld [vmem:[%s2888_s25 + $0x20] sm:$0xff] (%p29_p3) }
  0x14   : > { %368 = vst [vmem:[%s2893_s26 + $0x10] sm:$0xff] (%p29_p3), %v367_v2  ;;  %v373_v5 = vld [vmem:[%s2888_s25 + $0x28] sm:$0xff] (%p29_p3)  ;;  %370 = vst [vmem:[%s2893_s26 + $0x18] sm:$0xff] (%p29_p3), %v369_v3  ;;  %v375_v6 = vld [vmem:[%s2888_s25 + $0x30] sm:$0xff] (%p29_p3) }
  0x15   : > { %372 = vst [vmem:[%s2893_s26 + $0x20] sm:$0xff] %v371_v4  ;;  %374 = vst [vmem:[%s2893_s26 + $0x28] sm:$0xff] %v373_v5  ;;  %v377_v7 = vld [vmem:[%s2888_s25 + $0x38] sm:$0xff]  ;;  %v379_v8 = vld [vmem:[%s2888_s25 + $0x40] sm:$0xff] }
  0x16   : > { %376 = vst [vmem:[%s2893_s26 + $0x30] sm:$0xff] %v375_v6  ;;  %378 = vst [vmem:[%s2893_s26 + $0x38] sm:$0xff] %v377_v7  ;;  %v381_v9 = vld [vmem:[%s2888_s25 + $0x48] sm:$0xff]  ;;  %v383_v10 = vld [vmem:[%s2888_s25 + $0x50] sm:$0xff] }
  0x17   : > { %380 = vst [vmem:[%s2893_s26 + $0x40] sm:$0xff] %v379_v8  ;;  %v385_v11 = vld [vmem:[%s2888_s25 + $0x58] sm:$0xff]  ;;  %382 = vst [vmem:[%s2893_s26 + $0x48] sm:$0xff] %v381_v9  ;;  %v387_v12 = vld [vmem:[%s2888_s25 + $0x60] sm:$0xff] }
  0x18   : > { %384 = vst [vmem:[%s2893_s26 + $0x50] sm:$0xff] %v383_v10  ;;  %386 = vst [vmem:[%s2893_s26 + $0x58] sm:$0xff] %v385_v11  ;;  %v389_v13 = vld [vmem:[%s2888_s25 + $0x68] sm:$0xff]  ;;  %v391_v14 = vld [vmem:[%s2888_s25 + $0x70] sm:$0xff] }
  0x19   : > { %388 = vst [vmem:[%s2893_s26 + $0x60] sm:$0xff] %v387_v12  ;;  %390 = vst [vmem:[%s2893_s26 + $0x68] sm:$0xff] %v389_v13  ;;  %v393_v15 = vld [vmem:[%s2888_s25 + $0x78] sm:$0xff]  ;;  %v395_v16 = vld [vmem:[%s2888_s25 + $0x80] sm:$0xff] }
  0x1a   : > { %392 = vst [vmem:[%s2893_s26 + $0x70] sm:$0xff] %v391_v14  ;;  %v397_v17 = vld [vmem:[%s2888_s25 + $0x88] sm:$0xff]  ;;  %394 = vst [vmem:[%s2893_s26 + $0x78] sm:$0xff] %v393_v15  ;;  %v399_v18 = vld [vmem:[%s2888_s25 + $0x90] sm:$0xff] }
  0x1b   : > { %396 = vst [vmem:[%s2893_s26 + $0x80] sm:$0xff] %v395_v16  ;;  %398 = vst [vmem:[%s2893_s26 + $0x88] sm:$0xff] %v397_v17  ;;  %v401_v19 = vld [vmem:[%s2888_s25 + $0x98] sm:$0xff]  ;;  %v403_v20 = vld [vmem:[%s2888_s25 + $0xa0] sm:$0xff] }
  0x1c   : > { %400 = vst [vmem:[%s2893_s26 + $0x90] sm:$0xff] %v399_v18  ;;  %402 = vst [vmem:[%s2893_s26 + $0x98] sm:$0xff] %v401_v19  ;;  %v405_v21 = vld [vmem:[%s2888_s25 + $0xa8] sm:$0xff]  ;;  %v407_v22 = vld [vmem:[%s2888_s25 + $0xb0] sm:$0xff] }
  0x1d   : > { %404 = vst [vmem:[%s2893_s26 + $0xa0] sm:$0xff] %v403_v20  ;;  %v409_v23 = vld [vmem:[%s2888_s25 + $0xb8] sm:$0xff]  ;;  %406 = vst [vmem:[%s2893_s26 + $0xa8] sm:$0xff] %v405_v21  ;;  %v411_v24 = vld [vmem:[%s2888_s25 + $0xc0] sm:$0xff] }
  0x1e   : > { %408 = vst [vmem:[%s2893_s26 + $0xb0] sm:$0xff] %v407_v22  ;;  %410 = vst [vmem:[%s2893_s26 + $0xb8] sm:$0xff] %v409_v23  ;;  %v413_v25 = vld [vmem:[%s2888_s25 + $0x190] sm:$0xff]  ;;  %v415_v26 = vld [vmem:[%s2888_s25 + $0x198] sm:$0xff] }
  0x1f   : > { %412 = vst [vmem:[%s2893_s26 + $0xc0] sm:$0xff] %v411_v24  ;;  %414 = vst [vmem:[%s2893_s26 + $0xc8] sm:$0xff] %v413_v25  ;;  %v417_v27 = vld [vmem:[%s2888_s25 + $0x1a0] sm:$0xff]  ;;  %v419_v28 = vld [vmem:[%s2888_s25 + $0x1a8] sm:$0xff] }
  0x20   : > { %416 = vst [vmem:[%s2893_s26 + $0xd0] sm:$0xff] %v415_v26  ;;  %v421_v29 = vld [vmem:[%s2888_s25 + $0x1b0] sm:$0xff]  ;;  %418 = vst [vmem:[%s2893_s26 + $0xd8] sm:$0xff] %v417_v27  ;;  %v423_v30 = vld [vmem:[%s2888_s25 + $0x1b8] sm:$0xff] }
  0x21   : > { %420 = vst [vmem:[%s2893_s26 + $0xe0] sm:$0xff] %v419_v28  ;;  %422 = vst [vmem:[%s2893_s26 + $0xe8] sm:$0xff] %v421_v29  ;;  %v425_v31 = vld [vmem:[%s2888_s25 + $0x1c0] sm:$0xff]  ;;  %v427_v32 = vld [vmem:[%s2888_s25 + $0x1c8] sm:$0xff] }
  0x22   : > { %424 = vst [vmem:[%s2893_s26 + $0xf0] sm:$0xff] %v423_v30  ;;  %426 = vst [vmem:[%s2893_s26 + $0xf8] sm:$0xff] %v425_v31  ;;  %v429_v33 = vld [vmem:[%s2888_s25 + $0x1d0] sm:$0xff]  ;;  %v431_v34 = vld [vmem:[%s2888_s25 + $0x1d8] sm:$0xff] }
  0x23   : > { %428 = vst [vmem:[%s2893_s26 + $0x100] sm:$0xff] %v427_v32  ;;  %v433_v35 = vld [vmem:[%s2888_s25 + $0x1e0] sm:$0xff]  ;;  %430 = vst [vmem:[%s2893_s26 + $0x108] sm:$0xff] %v429_v33  ;;  %v435_v36 = vld [vmem:[%s2888_s25 + $0x1e8] sm:$0xff] }
  0x24   : > { %432 = vst [vmem:[%s2893_s26 + $0x110] sm:$0xff] %v431_v34  ;;  %434 = vst [vmem:[%s2893_s26 + $0x118] sm:$0xff] %v433_v35  ;;  %v437_v37 = vld [vmem:[%s2888_s25 + $0x1f0] sm:$0xff]  ;;  %v439_v38 = vld [vmem:[%s2888_s25 + $0x1f8] sm:$0xff] }
  0x25   : > { %436 = vst [vmem:[%s2893_s26 + $0x120] sm:$0xff] %v435_v36  ;;  %438 = vst [vmem:[%s2893_s26 + $0x128] sm:$0xff] %v437_v37  ;;  %v441_v39 = vld [vmem:[%s2888_s25 + $0x200] sm:$0xff]  ;;  %v443_v40 = vld [vmem:[%s2888_s25 + $0x208] sm:$0xff] }
  0x26   : > { %440 = vst [vmem:[%s2893_s26 + $0x130] sm:$0xff] %v439_v38  ;;  %v445_v41 = vld [vmem:[%s2888_s25 + $0x210] sm:$0xff]  ;;  %442 = vst [vmem:[%s2893_s26 + $0x138] sm:$0xff] %v441_v39  ;;  %v447_v42 = vld [vmem:[%s2888_s25 + $0x218] sm:$0xff] }
  0x27   : > { %444 = vst [vmem:[%s2893_s26 + $0x140] sm:$0xff] %v443_v40  ;;  %446 = vst [vmem:[%s2893_s26 + $0x148] sm:$0xff] %v445_v41  ;;  %v449_v43 = vld [vmem:[%s2888_s25 + $0x220] sm:$0xff]  ;;  %v451_v44 = vld [vmem:[%s2888_s25 + $0x228] sm:$0xff] }
  0x28   : > { %448 = vst [vmem:[%s2893_s26 + $0x150] sm:$0xff] %v447_v42  ;;  %450 = vst [vmem:[%s2893_s26 + $0x158] sm:$0xff] %v449_v43  ;;  %v453_v45 = vld [vmem:[%s2888_s25 + $0x230] sm:$0xff]  ;;  %v455_v46 = vld [vmem:[%s2888_s25 + $0x238] sm:$0xff] }
  0x29   : > { %452 = vst [vmem:[%s2893_s26 + $0x160] sm:$0xff] %v451_v44  ;;  %v457_v47 = vld [vmem:[%s2888_s25 + $0x240] sm:$0xff]  ;;  %454 = vst [vmem:[%s2893_s26 + $0x168] sm:$0xff] %v453_v45  ;;  %v459_v48 = vld [vmem:[%s2888_s25 + $0x248] sm:$0xff] }
  0x2a   : > { %456 = vst [vmem:[%s2893_s26 + $0x170] sm:$0xff] %v455_v46  ;;  %458 = vst [vmem:[%s2893_s26 + $0x178] sm:$0xff] %v457_v47  ;;  %v461_v49 = vld [vmem:[%s2888_s25 + $0x250] sm:$0xff]  ;;  %v463_v50 = vld [vmem:[%s2888_s25 + $0x320] sm:$0xff] }
  0x2b   : > { %460 = vst [vmem:[%s2893_s26 + $0x180] sm:$0xff] %v459_v48  ;;  %462 = vst [vmem:[%s2893_s26 + $0x188] sm:$0xff] %v461_v49  ;;  %v465_v51 = vld [vmem:[%s2888_s25 + $0x328] sm:$0xff]  ;;  %v467_v52 = vld [vmem:[%s2888_s25 + $0x330] sm:$0xff] }
  0x2c   : > { %464 = vst [vmem:[%s2893_s26 + $0x190] sm:$0xff] %v463_v50  ;;  %v469_v53 = vld [vmem:[%s2888_s25 + $0x338] sm:$0xff]  ;;  %466 = vst [vmem:[%s2893_s26 + $0x198] sm:$0xff] %v465_v51  ;;  %v471_v54 = vld [vmem:[%s2888_s25 + $0x340] sm:$0xff] }
  0x2d   : > { %468 = vst [vmem:[%s2893_s26 + $0x1a0] sm:$0xff] %v467_v52  ;;  %470 = vst [vmem:[%s2893_s26 + $0x1a8] sm:$0xff] %v469_v53  ;;  %v473_v55 = vld [vmem:[%s2888_s25 + $0x348] sm:$0xff]  ;;  %v475_v56 = vld [vmem:[%s2888_s25 + $0x350] sm:$0xff] }
  0x2e   : > { %472 = vst [vmem:[%s2893_s26 + $0x1b0] sm:$0xff] %v471_v54  ;;  %474 = vst [vmem:[%s2893_s26 + $0x1b8] sm:$0xff] %v473_v55  ;;  %v477_v57 = vld [vmem:[%s2888_s25 + $0x358] sm:$0xff]  ;;  %v479_v58 = vld [vmem:[%s2888_s25 + $0x360] sm:$0xff] }
  0x2f   : > { %476 = vst [vmem:[%s2893_s26 + $0x1c0] sm:$0xff] %v475_v56  ;;  %v481_v59 = vld [vmem:[%s2888_s25 + $0x368] sm:$0xff]  ;;  %478 = vst [vmem:[%s2893_s26 + $0x1c8] sm:$0xff] %v477_v57  ;;  %v483_v60 = vld [vmem:[%s2888_s25 + $0x370] sm:$0xff] }
  0x30   : > { %480 = vst [vmem:[%s2893_s26 + $0x1d0] sm:$0xff] %v479_v58  ;;  %482 = vst [vmem:[%s2893_s26 + $0x1d8] sm:$0xff] %v481_v59  ;;  %v485_v61 = vld [vmem:[%s2888_s25 + $0x378] sm:$0xff]  ;;  %v487_v62 = vld [vmem:[%s2888_s25 + $0x380] sm:$0xff] }
  0x31   : > { %484 = vst [vmem:[%s2893_s26 + $0x1e0] sm:$0xff] %v483_v60  ;;  %486 = vst [vmem:[%s2893_s26 + $0x1e8] sm:$0xff] %v485_v61  ;;  %v489_v63 = vld [vmem:[%s2888_s25 + $0x388] sm:$0xff]  ;;  %v491_v0 = vld [vmem:[%s2888_s25 + $0x390] sm:$0xff] }
  0x32   : > { %488 = vst [vmem:[%s2893_s26 + $0x1f0] sm:$0xff] %v487_v62  ;;  %v493_v1 = vld [vmem:[%s2888_s25 + $0x398] sm:$0xff]  ;;  %490 = vst [vmem:[%s2893_s26 + $0x1f8] sm:$0xff] %v489_v63  ;;  %v495_v2 = vld [vmem:[%s2888_s25 + $0x3a0] sm:$0xff] }
  0x33   : > { %492 = vst [vmem:[%s2893_s26 + $0x200] sm:$0xff] %v491_v0  ;;  %494 = vst [vmem:[%s2893_s26 + $0x208] sm:$0xff] %v493_v1  ;;  %v497_v3 = vld [vmem:[%s2888_s25 + $0x3a8] sm:$0xff]  ;;  %v499_v4 = vld [vmem:[%s2888_s25 + $0x3b0] sm:$0xff] }
  0x34   : > { %496 = vst [vmem:[%s2893_s26 + $0x210] sm:$0xff] %v495_v2  ;;  %498 = vst [vmem:[%s2893_s26 + $0x218] sm:$0xff] %v497_v3  ;;  %v501_v5 = vld [vmem:[%s2888_s25 + $0x3b8] sm:$0xff]  ;;  %v503_v6 = vld [vmem:[%s2888_s25 + $0x3c0] sm:$0xff] }
  0x35   : > { %500 = vst [vmem:[%s2893_s26 + $0x220] sm:$0xff] %v499_v4  ;;  %v505_v7 = vld [vmem:[%s2888_s25 + $0x3c8] sm:$0xff]  ;;  %502 = vst [vmem:[%s2893_s26 + $0x228] sm:$0xff] %v501_v5  ;;  %v507_v8 = vld [vmem:[%s2888_s25 + $0x3d0] sm:$0xff] }
  0x36   : > { %504 = vst [vmem:[%s2893_s26 + $0x230] sm:$0xff] %v503_v6  ;;  %506 = vst [vmem:[%s2893_s26 + $0x238] sm:$0xff] %v505_v7  ;;  %v509_v9 = vld [vmem:[%s2888_s25 + $0x3d8] sm:$0xff]  ;;  %v511_v10 = vld [vmem:[%s2888_s25 + $0x3e0] sm:$0xff] }
  0x37   : > { %508 = vst [vmem:[%s2893_s26 + $0x240] sm:$0xff] %v507_v8  ;;  %510 = vst [vmem:[%s2893_s26 + $0x248] sm:$0xff] %v509_v9  ;;  %v513_v11 = vld [vmem:[%s2888_s25 + $0x4b0] sm:$0xff]  ;;  %v515_v12 = vld [vmem:[%s2888_s25 + $0x4b8] sm:$0xff] }
  0x38   : > { %512 = vst [vmem:[%s2893_s26 + $0x250] sm:$0xff] %v511_v10  ;;  %v517_v13 = vld [vmem:[%s2888_s25 + $0x4c0] sm:$0xff]  ;;  %514 = vst [vmem:[%s2893_s26 + $0x258] sm:$0xff] %v513_v11  ;;  %v519_v14 = vld [vmem:[%s2888_s25 + $0x4c8] sm:$0xff] }
  0x39   : > { %516 = vst [vmem:[%s2893_s26 + $0x260] sm:$0xff] %v515_v12  ;;  %518 = vst [vmem:[%s2893_s26 + $0x268] sm:$0xff] %v517_v13  ;;  %v521_v15 = vld [vmem:[%s2888_s25 + $0x4d0] sm:$0xff]  ;;  %v523_v16 = vld [vmem:[%s2888_s25 + $0x4d8] sm:$0xff] }
  0x3a   : > { %520 = vst [vmem:[%s2893_s26 + $0x270] sm:$0xff] %v519_v14  ;;  %522 = vst [vmem:[%s2893_s26 + $0x278] sm:$0xff] %v521_v15  ;;  %v525_v17 = vld [vmem:[%s2888_s25 + $0x4e0] sm:$0xff]  ;;  %v527_v18 = vld [vmem:[%s2888_s25 + $0x4e8] sm:$0xff] }
  0x3b   : > { %524 = vst [vmem:[%s2893_s26 + $0x280] sm:$0xff] %v523_v16  ;;  %v529_v19 = vld [vmem:[%s2888_s25 + $0x4f0] sm:$0xff]  ;;  %526 = vst [vmem:[%s2893_s26 + $0x288] sm:$0xff] %v525_v17  ;;  %v531_v20 = vld [vmem:[%s2888_s25 + $0x4f8] sm:$0xff] }
  0x3c   : > { %528 = vst [vmem:[%s2893_s26 + $0x290] sm:$0xff] %v527_v18  ;;  %530 = vst [vmem:[%s2893_s26 + $0x298] sm:$0xff] %v529_v19  ;;  %v533_v21 = vld [vmem:[%s2888_s25 + $0x500] sm:$0xff]  ;;  %v535_v22 = vld [vmem:[%s2888_s25 + $0x508] sm:$0xff] }
  0x3d   : > { %532 = vst [vmem:[%s2893_s26 + $0x2a0] sm:$0xff] %v531_v20  ;;  %534 = vst [vmem:[%s2893_s26 + $0x2a8] sm:$0xff] %v533_v21  ;;  %v537_v23 = vld [vmem:[%s2888_s25 + $0x510] sm:$0xff]  ;;  %v539_v24 = vld [vmem:[%s2888_s25 + $0x518] sm:$0xff] }
  0x3e   : > { %536 = vst [vmem:[%s2893_s26 + $0x2b0] sm:$0xff] %v535_v22  ;;  %v541_v25 = vld [vmem:[%s2888_s25 + $0x520] sm:$0xff]  ;;  %538 = vst [vmem:[%s2893_s26 + $0x2b8] sm:$0xff] %v537_v23  ;;  %v543_v26 = vld [vmem:[%s2888_s25 + $0x528] sm:$0xff] }
  0x3f   : > { %540 = vst [vmem:[%s2893_s26 + $0x2c0] sm:$0xff] %v539_v24  ;;  %542 = vst [vmem:[%s2893_s26 + $0x2c8] sm:$0xff] %v541_v25  ;;  %v545_v27 = vld [vmem:[%s2888_s25 + $0x530] sm:$0xff]  ;;  %v547_v28 = vld [vmem:[%s2888_s25 + $0x538] sm:$0xff] }
  0x40   : > { %544 = vst [vmem:[%s2893_s26 + $0x2d0] sm:$0xff] %v543_v26  ;;  %546 = vst [vmem:[%s2893_s26 + $0x2d8] sm:$0xff] %v545_v27  ;;  %v549_v29 = vld [vmem:[%s2888_s25 + $0x540] sm:$0xff]  ;;  %v551_v30 = vld [vmem:[%s2888_s25 + $0x548] sm:$0xff] }
  0x41   : > { %548 = vst [vmem:[%s2893_s26 + $0x2e0] sm:$0xff] %v547_v28  ;;  %v553_v31 = vld [vmem:[%s2888_s25 + $0x550] sm:$0xff]  ;;  %550 = vst [vmem:[%s2893_s26 + $0x2e8] sm:$0xff] %v549_v29  ;;  %v555_v32 = vld [vmem:[%s2888_s25 + $0x558] sm:$0xff] }
  0x42   : > { %552 = vst [vmem:[%s2893_s26 + $0x2f0] sm:$0xff] %v551_v30  ;;  %554 = vst [vmem:[%s2893_s26 + $0x2f8] sm:$0xff] %v553_v31  ;;  %v557_v33 = vld [vmem:[%s2888_s25 + $0x560] sm:$0xff]  ;;  %v559_v34 = vld [vmem:[%s2888_s25 + $0x568] sm:$0xff] }
  0x43   : > { %556 = vst [vmem:[%s2893_s26 + $0x300] sm:$0xff] %v555_v32  ;;  %558 = vst [vmem:[%s2893_s26 + $0x308] sm:$0xff] %v557_v33  ;;  %v561_v35 = vld [vmem:[%s2888_s25 + $0x570] sm:$0xff] }
  0x44   : > { %560 = vst [vmem:[%s2893_s26 + $0x310] sm:$0xff] %v559_v34  ;;  %562 = vst [vmem:[%s2893_s26 + $0x318] sm:$0xff] %v561_v35 }
  0x45 PF: > { %p2007_p5 = scmp.ge.s32.totalorder %s2828_s14, 1  ;;  %p567_p6 = scmp.lt.s32.totalorder %s2828_s14, 3 }
  0x47   : > { %p568_p7 = pnand %p2007_p5, %p567_p6 }
  0x48   : > { %v604_v36 = vld [vmem:[%s3882_s1] sm:$0xff] (!%p568_p7)  ;;  %v605_v37 = vld [vmem:[%s3882_s1 + $0x8] sm:$0xff] (!%p568_p7)  ;;  %v606_v38 = vld [vmem:[%s3882_s1 + $0x10] sm:$0xff] (!%p568_p7)  ;;  %v2830_v39 = vmov (!%p568_p7), 0.0|0.0   ;;  %vm2831_vm0 = vmmov (!%p568_p7), 0   ;;  %v2832_v42 = vmov (!%p568_p7), 0.0  }
  0x49   : > { %571 = sbr.rel (%p568_p7) target bundleno = 511 (0x1ff), region = 66  ;;  %2712 = vmatprep.subr.bf16.mxu0 (!%p568_p7), %v2830_v39  ;;  %v2713_v40 = vpack.c.bf16 (!%p568_p7), %v605_v37, %v604_v36  ;;  %2728 = vmatprep.subr.bf16.mxu1 (!%p568_p7), %v2830_v39  ;;  %v607_v41 = vld [vmem:[%s3882_s1 + $0x18] sm:$0xff] (!%p568_p7)  ;;  %v608_v44 = vld [vmem:[%s3882_s1 + $0x20] sm:$0xff] (!%p568_p7)  ;;  %v609_v45 = vld [vmem:[%s3882_s1 + $0x28] sm:$0xff] (!%p568_p7)  ;;  %s574_s22 = sand.u32 (!%p568_p7), 1, %s2820_s12   ;;  %vm715_vm1 = vcmask (!%p568_p7), 1042432  }
  0x4a   : > { %2352 = vmatprep.mubr.msk.f32.mxu0 (!%p568_p7), %vm2831_vm0, %v2832_v42  ;;  %2447 = vmatprep.mubr.msk.f32.mxu1 (!%p568_p7), %vm2831_vm0, %v2832_v42  ;;  %v2716_v43 = vpack.c.bf16 (!%p568_p7), %v607_v41, %v606_v38  ;;  %v2719_v46 = vpack.c.bf16 (!%p568_p7), %v609_v45, %v608_v44  ;;  %v610_v47 = vld [vmem:[%s3882_s1 + $0x30] sm:$0xff] (!%p568_p7)  ;;  %v611_v48 = vld [vmem:[%s3882_s1 + $0x38] sm:$0xff] (!%p568_p7)  ;;  %v612_v50 = vld [vmem:[%s3882_s1 + $0x40] sm:$0xff] (!%p568_p7)  ;;  %s2777_s27 = smul.u32 (!%p568_p7), 800, %s574_s22  ;;  %vm2833_vm2 = vmmov (!%p568_p7), 1   ;;  %vm639_vm4 = vcmask (!%p568_p7), 613376  }
  0x4b   : > { %2714 = vmatpush3.bf16.msra.mxu0 (!%p568_p7), %v2713_v40  ;;  %2730 = vmatpush3.bf16.msra.mxu1 (!%p568_p7), %v2713_v40  ;;  %v2722_v49 = vpack.c.bf16 (!%p568_p7), %v611_v48, %v610_v47  ;;  %v613_v51 = vld [vmem:[%s3882_s1 + $0x48] sm:$0x7] (!%p568_p7)  ;;  %vm3138_vm3 = vmpackc.low (!%p568_p7), %vm715_vm1, %vm2833_vm2  ;;  %s598_s28 = smul.u32 (!%p568_p7), 25, %s2002_s15  ;;  %vm1914_vm5 = vcmask (!%p568_p7), 48128  }
  0x4c   : > { %2715 = vmatprep.subr.bf16.mxu0 (!%p568_p7), %v2830_v39  ;;  %2731 = vmatprep.subr.bf16.mxu1 (!%p568_p7), %v2830_v39  ;;  %v2725_v52 = vpack.c.bf16 (!%p568_p7), %v613_v51, %v612_v50  ;;  %s3147_s12 = scalar_lea.vmem (!%p568_p7), [#allocation2], %s2777_s27 }
  0x4d   : > { %v614_v54 = vld [vmem:[%s3147_s12] sm:$0xff] (!%p568_p7)  ;;  %v2035_v55 = vld [vmem:[%s3147_s12 + $0xc8] sm:$0xff] (!%p568_p7)  ;;  %v2036_v57 = vld [vmem:[%s3147_s12 + $0xd0] sm:$0xff] (!%p568_p7)  ;;  %p599_p8 = scmp.lt.s32.totalorder (!%p568_p7), %s598_s28, 49 }
  0x4e   : > { %v615_v56 = vld [vmem:[%s3147_s12 + $0x8] sm:$0xff] (!%p568_p7)  ;;  %v616_v58 = vld [vmem:[%s3147_s12 + $0x10] sm:$0xff] (!%p568_p7)  ;;  %v2037_v59 = vld [vmem:[%s3147_s12 + $0xd8] sm:$0xff] (!%p568_p7) }
  0x4f   : > { %2717 = vmatpush3.bf16.msra.mxu0 (!%p568_p7), %v2716_v43  ;;  %2733 = vmatpush3.bf16.msra.mxu1 (!%p568_p7), %v2716_v43  ;;  %v617_v60 = vld [vmem:[%s3147_s12 + $0x18] sm:$0xff] (!%p568_p7)  ;;  %v2038_v61 = vld [vmem:[%s3147_s12 + $0xe0] sm:$0xff] (!%p568_p7)  ;;  %v2039_v63 = vld [vmem:[%s3147_s12 + $0xe8] sm:$0xff] (!%p568_p7) }
  0x50   : > { %2718 = vmatprep.subr.bf16.mxu0 %v2830_v39  ;;  %2734 = vmatprep.subr.bf16.mxu1 %v2830_v39  ;;  %v618_v62 = vld [vmem:[%s3147_s12 + $0x20] sm:$0xff]  ;;  %v619_v0 = vld [vmem:[%s3147_s12 + $0x28] sm:$0xff]  ;;  %v2040_v1 = vld [vmem:[%s3147_s12 + $0xf0] sm:$0xff]  ;;  %s3914_s28 = smov (!%p599_p8, %s598_s28), 49 }
  0x51   : > { %v620_v2 = vld [vmem:[%s3147_s12 + $0x30] sm:$0xff]  ;;  %v2041_v3 = vld [vmem:[%s3147_s12 + $0xf8] sm:$0xff]  ;;  %v2042_v5 = vld [vmem:[%s3147_s12 + $0x100] sm:$0xff]  ;;  %s2008_s29 = sshll.u32 %s3914_s28, 3 }
  0x52   : > { %v621_v4 = vld [vmem:[%s3147_s12 + $0x38] sm:$0xff]  ;;  %v622_v6 = vld [vmem:[%s3147_s12 + $0x40] sm:$0xff]  ;;  %v2043_v7 = vld [vmem:[%s3147_s12 + $0x108] sm:$0xff]  ;;  %s3726_s5 = scalar_lea.vmem %s3884_s3, %s2008_s29 }
  0x53   : > { %2720 = vmatpush3.bf16.msra.mxu0 %v2719_v46  ;;  %2736 = vmatpush3.bf16.msra.mxu1 %v2719_v46  ;;  %v623_v8 = vld [vmem:[%s3147_s12 + $0x48] sm:$0xff]  ;;  %v2044_v9 = vld [vmem:[%s3147_s12 + $0x110] sm:$0xff]  ;;  %v2045_v11 = vld [vmem:[%s3147_s12 + $0x118] sm:$0xff] }
  0x54   : > { %2721 = vmatprep.subr.bf16.mxu0 %v2830_v39  ;;  %2737 = vmatprep.subr.bf16.mxu1 %v2830_v39  ;;  %v624_v10 = vld [vmem:[%s3147_s12 + $0x50] sm:$0xff]  ;;  %v625_v12 = vld [vmem:[%s3147_s12 + $0x58] sm:$0xff]  ;;  %v2046_v13 = vld [vmem:[%s3147_s12 + $0x120] sm:$0xff] }
  0x55   : > { %v626_v14 = vld [vmem:[%s3147_s12 + $0x60] sm:$0xff]  ;;  %v2047_v15 = vld [vmem:[%s3147_s12 + $0x128] sm:$0xff]  ;;  %v2048_v17 = vld [vmem:[%s3147_s12 + $0x130] sm:$0xff] }
  0x56   : > { %v627_v16 = vld [vmem:[%s3147_s12 + $0x68] sm:$0xff]  ;;  %v628_v18 = vld [vmem:[%s3147_s12 + $0x70] sm:$0xff]  ;;  %v2049_v19 = vld [vmem:[%s3147_s12 + $0x138] sm:$0xff] }
  0x57   : > { %2723 = vmatpush3.bf16.msra.mxu0 %v2722_v49  ;;  %2739 = vmatpush3.bf16.msra.mxu1 %v2722_v49  ;;  %v629_v20 = vld [vmem:[%s3147_s12 + $0x78] sm:$0xff]  ;;  %v2050_v21 = vld [vmem:[%s3147_s12 + $0x140] sm:$0xff]  ;;  %v2051_v23 = vld [vmem:[%s3147_s12 + $0x148] sm:$0xff] }
  0x58   : > { %2724 = vmatprep.subr.bf16.mxu0 %v2830_v39  ;;  %2740 = vmatprep.subr.bf16.mxu1 %v2830_v39  ;;  %v630_v22 = vld [vmem:[%s3147_s12 + $0x80] sm:$0xff]  ;;  %v631_v24 = vld [vmem:[%s3147_s12 + $0x88] sm:$0xff]  ;;  %v2052_v25 = vld [vmem:[%s3147_s12 + $0x150] sm:$0xff] }
  0x59   : > { %v632_v26 = vld [vmem:[%s3147_s12 + $0x90] sm:$0xff]  ;;  %v2053_v27 = vld [vmem:[%s3147_s12 + $0x158] sm:$0xff]  ;;  %v2054_v29 = vld [vmem:[%s3147_s12 + $0x160] sm:$0xff] }
  0x5a   : > { %v633_v28 = vld [vmem:[%s3147_s12 + $0x98] sm:$0xff]  ;;  %v634_v30 = vld [vmem:[%s3147_s12 + $0xa0] sm:$0xff]  ;;  %v2055_v31 = vld [vmem:[%s3147_s12 + $0x168] sm:$0xff] }
  0x5b   : > { %2727 = vmatpush3.bf16.msk.msra.mxu0 %vm3138_vm3, %v2725_v52  ;;  %2743 = vmatpush3.bf16.msk.msra.mxu1 %vm3138_vm3, %v2725_v52  ;;  %v635_v32 = vld [vmem:[%s3147_s12 + $0xa8] sm:$0xff]  ;;  %v2056_v33 = vld [vmem:[%s3147_s12 + $0x170] sm:$0xff]  ;;  %v2057_v35 = vld [vmem:[%s3147_s12 + $0x178] sm:$0xff] }
  0x5c   : > { %2744 = vmatprep.subr.bf16.mxu0 %v2830_v39  ;;  %2760 = vmatprep.subr.bf16.mxu1 %v2830_v39  ;;  %v636_v34 = vld [vmem:[%s3147_s12 + $0xb0] sm:$0xff]  ;;  %v637_v36 = vld [vmem:[%s3147_s12 + $0xb8] sm:$0xff]  ;;  %v2058_v37 = vld [vmem:[%s3147_s12 + $0x180] sm:$0xff] }
  0x5d   : > { %v638_v38 = vld [vmem:[%s3147_s12 + $0xc0] sm:$0xff]  ;;  %v2137_v41 = vld [vmem:[%s3147_s12 + $0x258] sm:$0xff]  ;;  %v2089_v47 = vld [vmem:[%s3147_s12 + $0x1a8] sm:$0xff] }
  0x5e   : > { %2353 = vmatmul.mubr.msk.f32.vlgmr.msra.gmra.mrb[0].mxu0 %vm639_vm4, %v614_v54  ;;  %2448 = vmatmul.mubr.msk.f32.vlgmr.msra.gmra.mrb[0].mxu1 %vm639_vm4, %v2035_v55  ;;  %v2138_v44 = vld [vmem:[%s3147_s12 + $0x260] sm:$0xff]  ;;  %v2140_v48 = vld [vmem:[%s3147_s12 + $0x270] sm:$0xff]  ;;  %v2141_v50 = vld [vmem:[%s3147_s12 + $0x278] sm:$0xff] }
  0x5f   : > { %2746 = vmatpush3.bf16.msra.mxu0 %v2713_v40  ;;  %2355 = vmatprep.mubr.msk.f32.mxu0 %vm2831_vm0, %v2832_v42  ;;  %v2088_v45 = vld [vmem:[%s3147_s12 + $0x1a0] sm:$0xff]  ;;  %v2091_v51 = vld [vmem:[%s3147_s12 + $0x1b8] sm:$0xff]  ;;  %v2143_v54 = vld [vmem:[%s3147_s12 + $0x288] sm:$0xff] }
  0x60   : > { %2762 = vmatpush3.bf16.msra.mxu1 %v2713_v40  ;;  %2450 = vmatprep.mubr.msk.f32.mxu1 %vm2831_vm0, %v2832_v42  ;;  %v2086_v40 = vld [vmem:[%s3147_s12 + $0x190] sm:$0xff]  ;;  %v2092_v53 = vld [vmem:[%s3147_s12 + $0x1c0] sm:$0xff]  ;;  %v2093_v55 = vld [vmem:[%s3147_s12 + $0x1c8] sm:$0xff] }
  0x61   : > { %2747 = vmatprep.subr.bf16.mxu0 %v2830_v39  ;;  %2763 = vmatprep.subr.bf16.mxu1 %v2830_v39 }
  0x62   : > { %2356 = vmatmul.mubr.msk.f32.gmra.mrb[2].mxu0 %vm639_vm4, %v615_v56  ;;  %2451 = vmatmul.mubr.msk.f32.gmra.mrb[2].mxu1 %vm639_vm4, %v2036_v57  ;;  %v2144_v56 = vld [vmem:[%s3147_s12 + $0x290] sm:$0xff] }
  0x63   : > { %2358 = vmatprep.mubr.msk.f32.mxu0 %vm2831_vm0, %v2832_v42  ;;  %2453 = vmatprep.mubr.msk.f32.mxu1 %vm2831_vm0, %v2832_v42  ;;  %v2094_v57 = vld [vmem:[%s3147_s12 + $0x1d0] sm:$0xff] }
  0x64   : > { %2749 = vmatpush3.bf16.msra.mxu0 %v2716_v43  ;;  %2765 = vmatpush3.bf16.msra.mxu1 %v2716_v43  ;;  %v2087_v43 = vld [vmem:[%s3147_s12 + $0x198] sm:$0xff] }
  0x65   : > { %2750 = vmatprep.subr.bf16.mxu0 %v2830_v39  ;;  %2766 = vmatprep.subr.bf16.mxu1 %v2830_v39 }
  0x66   : > { %2359 = vmatmul.mubr.msk.f32.gmra.mrb[4].mxu0 %vm639_vm4, %v616_v58  ;;  %2454 = vmatmul.mubr.msk.f32.gmra.mrb[4].mxu1 %vm639_vm4, %v2037_v59  ;;  %v2145_v58 = vld [vmem:[%s3147_s12 + $0x298] sm:$0xff] }
  0x67   : > { %2361 = vmatprep.mubr.msk.f32.mxu0 %vm2831_vm0, %v2832_v42  ;;  %2456 = vmatprep.mubr.msk.f32.mxu1 %vm2831_vm0, %v2832_v42  ;;  %v2095_v59 = vld [vmem:[%s3147_s12 + $0x1d8] sm:$0xff] }
  0x68   : > { %2752 = vmatpush3.bf16.msra.mxu0 %v2719_v46  ;;  %2768 = vmatpush3.bf16.msra.mxu1 %v2719_v46  ;;  %v2139_v46 = vld [vmem:[%s3147_s12 + $0x268] sm:$0xff] }
  0x69   : > { %2753 = vmatprep.subr.bf16.mxu0 %v2830_v39  ;;  %2769 = vmatprep.subr.bf16.mxu1 %v2830_v39 }
  0x6a   : > { %2362 = vmatmul.mubr.msk.f32.gmra.mrb[6].mxu0 %vm639_vm4, %v617_v60  ;;  %2457 = vmatmul.mubr.msk.f32.gmra.mrb[6].mxu1 %vm639_vm4, %v2038_v61  ;;  %v2146_v60 = vld [vmem:[%s3147_s12 + $0x2a0] sm:$0xff] }
  0x6b   : > { %2364 = vmatprep.mubr.msk.f32.mxu0 %vm2831_vm0, %v2832_v42  ;;  %2459 = vmatprep.mubr.msk.f32.mxu1 %vm2831_vm0, %v2832_v42  ;;  %v2096_v61 = vld [vmem:[%s3147_s12 + $0x1e0] sm:$0xff] }
  0x6c   : > { %2755 = vmatpush3.bf16.msra.mxu0 %v2722_v49  ;;  %2771 = vmatpush3.bf16.msra.mxu1 %v2722_v49  ;;  %v2090_v49 = vld [vmem:[%s3147_s12 + $0x1b0] sm:$0xff] }
  0x6d   : > { %2756 = vmatprep.subr.bf16.mxu0 %v2830_v39  ;;  %2772 = vmatprep.subr.bf16.mxu1 %v2830_v39  ;;  %v2059_v39 = vld [vmem:[%s3147_s12 + $0x188] sm:$0xff] }
  0x6e   : > { %2365 = vmatmul.mubr.msk.f32.gmra.mrb[8].mxu0 %vm639_vm4, %v618_v62  ;;  %2460 = vmatmul.mubr.msk.f32.gmra.mrb[8].mxu1 %vm639_vm4, %v2039_v63  ;;  %v2147_v62 = vld [vmem:[%s3147_s12 + $0x2a8] sm:$0xff] }
  0x6f   : > { %2367 = vmatprep.mubr.msk.f32.mxu0 %vm2831_vm0, %v2832_v42  ;;  %2462 = vmatprep.mubr.msk.f32.mxu1 %vm2831_vm0, %v2832_v42  ;;  %v2097_v63 = vld [vmem:[%s3147_s12 + $0x1e8] sm:$0xff] }
  0x70   : > { %2759 = vmatpush3.bf16.msk.msra.mxu0 %vm3138_vm3, %v2725_v52  ;;  %2775 = vmatpush3.bf16.msk.msra.mxu1 %vm3138_vm3, %v2725_v52  ;;  %v2142_v52 = vld [vmem:[%s3147_s12 + $0x280] sm:$0xff] }
  0x72   : > { %2368 = vmatmul.mubr.msk.f32.gmra.mrb[10].mxu0 %vm639_vm4, %v619_v0  ;;  %2463 = vmatmul.mubr.msk.f32.gmra.mrb[10].mxu1 %vm639_vm4, %v2040_v1  ;;  %v2148_v0 = vld [vmem:[%s3147_s12 + $0x2b0] sm:$0xff] }
  0x73   : > { %2370 = vmatprep.mubr.msk.f32.mxu0 %vm2831_vm0, %v2832_v42  ;;  %2465 = vmatprep.mubr.msk.f32.mxu1 %vm2831_vm0, %v2832_v42  ;;  %v2098_v1 = vld [vmem:[%s3147_s12 + $0x1f0] sm:$0xff] }
  0x76   : > { %2371 = vmatmul.mubr.msk.f32.gmra.mrb[12].mxu0 %vm639_vm4, %v620_v2  ;;  %2466 = vmatmul.mubr.msk.f32.gmra.mrb[12].mxu1 %vm639_vm4, %v2041_v3  ;;  %v2149_v2 = vld [vmem:[%s3147_s12 + $0x2b8] sm:$0xff] }
  0x77   : > { %2373 = vmatprep.mubr.msk.f32.mxu0 %vm2831_vm0, %v2832_v42  ;;  %2468 = vmatprep.mubr.msk.f32.mxu1 %vm2831_vm0, %v2832_v42  ;;  %v2099_v3 = vld [vmem:[%s3147_s12 + $0x1f8] sm:$0xff] }
  0x7a   : > { %2374 = vmatmul.mubr.msk.f32.gmra.mrb[14].mxu0 %vm639_vm4, %v621_v4  ;;  %2469 = vmatmul.mubr.msk.f32.gmra.mrb[14].mxu1 %vm639_vm4, %v2042_v5  ;;  %v2150_v4 = vld [vmem:[%s3147_s12 + $0x2c0] sm:$0xff] }
  0x7b   : > { %2376 = vmatprep.mubr.msk.f32.mxu0 %vm2831_vm0, %v2832_v42  ;;  %2471 = vmatprep.mubr.msk.f32.mxu1 %vm2831_vm0, %v2832_v42  ;;  %v2100_v5 = vld [vmem:[%s3147_s12 + $0x200] sm:$0xff] }
  0x7e   : > { %2377 = vmatmul.mubr.msk.f32.gmra.mrb[16].mxu0 %vm639_vm4, %v622_v6  ;;  %2472 = vmatmul.mubr.msk.f32.gmra.mrb[16].mxu1 %vm639_vm4, %v2043_v7  ;;  %v2151_v6 = vld [vmem:[%s3147_s12 + $0x2c8] sm:$0xff] }
  0x7f   : > { %2379 = vmatprep.mubr.msk.f32.mxu0 %vm2831_vm0, %v2832_v42  ;;  %2474 = vmatprep.mubr.msk.f32.mxu1 %vm2831_vm0, %v2832_v42  ;;  %v2101_v7 = vld [vmem:[%s3147_s12 + $0x208] sm:$0xff] }
  0x82   : > { %2380 = vmatmul.mubr.msk.f32.gmra.mrb[18].mxu0 %vm639_vm4, %v623_v8  ;;  %2475 = vmatmul.mubr.msk.f32.gmra.mrb[18].mxu1 %vm639_vm4, %v2044_v9  ;;  %v2152_v8 = vld [vmem:[%s3147_s12 + $0x2d0] sm:$0xff] }
  0x83   : > { %2382 = vmatprep.mubr.msk.f32.mxu0 %vm2831_vm0, %v2832_v42  ;;  %2477 = vmatprep.mubr.msk.f32.mxu1 %vm2831_vm0, %v2832_v42  ;;  %v2102_v9 = vld [vmem:[%s3147_s12 + $0x210] sm:$0xff] }
  0x86   : > { %2383 = vmatmul.mubr.msk.f32.gmra.mrb[20].mxu0 %vm639_vm4, %v624_v10  ;;  %2478 = vmatmul.mubr.msk.f32.gmra.mrb[20].mxu1 %vm639_vm4, %v2045_v11  ;;  %v2153_v10 = vld [vmem:[%s3147_s12 + $0x2d8] sm:$0xff] }
  0x87   : > { %2385 = vmatprep.mubr.msk.f32.mxu0 %vm2831_vm0, %v2832_v42  ;;  %2480 = vmatprep.mubr.msk.f32.mxu1 %vm2831_vm0, %v2832_v42  ;;  %v2103_v11 = vld [vmem:[%s3147_s12 + $0x218] sm:$0xff] }
  0x8a   : > { %2386 = vmatmul.mubr.msk.f32.gmra.mrb[22].mxu0 %vm639_vm4, %v625_v12  ;;  %2481 = vmatmul.mubr.msk.f32.gmra.mrb[22].mxu1 %vm639_vm4, %v2046_v13  ;;  %v2154_v12 = vld [vmem:[%s3147_s12 + $0x2e0] sm:$0xff] }
  0x8b   : > { %2388 = vmatprep.mubr.msk.f32.mxu0 %vm2831_vm0, %v2832_v42  ;;  %2483 = vmatprep.mubr.msk.f32.mxu1 %vm2831_vm0, %v2832_v42  ;;  %v2104_v13 = vld [vmem:[%s3147_s12 + $0x220] sm:$0xff] }
  0x8e   : > { %2389 = vmatmul.mubr.msk.f32.gmra.mrb[24].mxu0 %vm639_vm4, %v626_v14  ;;  %2484 = vmatmul.mubr.msk.f32.gmra.mrb[24].mxu1 %vm639_vm4, %v2047_v15  ;;  %v2155_v14 = vld [vmem:[%s3147_s12 + $0x2e8] sm:$0xff] }
  0x8f   : > { %2391 = vmatprep.mubr.msk.f32.mxu0 %vm2831_vm0, %v2832_v42  ;;  %2486 = vmatprep.mubr.msk.f32.mxu1 %vm2831_vm0, %v2832_v42  ;;  %v2105_v15 = vld [vmem:[%s3147_s12 + $0x228] sm:$0xff] }
  0x92   : > { %2392 = vmatmul.mubr.msk.f32.gmra.mrb[26].mxu0 %vm639_vm4, %v627_v16  ;;  %2487 = vmatmul.mubr.msk.f32.gmra.mrb[26].mxu1 %vm639_vm4, %v2048_v17  ;;  %v2156_v16 = vld [vmem:[%s3147_s12 + $0x2f0] sm:$0xff] }
  0x93   : > { %2394 = vmatprep.mubr.msk.f32.mxu0 %vm2831_vm0, %v2832_v42  ;;  %2489 = vmatprep.mubr.msk.f32.mxu1 %vm2831_vm0, %v2832_v42  ;;  %v2106_v17 = vld [vmem:[%s3147_s12 + $0x230] sm:$0xff] }
  0x96   : > { %2395 = vmatmul.mubr.msk.f32.gmra.mrb[28].mxu0 %vm639_vm4, %v628_v18  ;;  %2490 = vmatmul.mubr.msk.f32.gmra.mrb[28].mxu1 %vm639_vm4, %v2049_v19  ;;  %v2157_v18 = vld [vmem:[%s3147_s12 + $0x2f8] sm:$0xff] }
  0x97   : > { %2397 = vmatprep.mubr.msk.f32.mxu0 %vm2831_vm0, %v2832_v42  ;;  %2492 = vmatprep.mubr.msk.f32.mxu1 %vm2831_vm0, %v2832_v42  ;;  %v2107_v19 = vld [vmem:[%s3147_s12 + $0x238] sm:$0xff] }
  0x9a   : > { %2398 = vmatmul.mubr.msk.f32.gmra.mrb[30].mxu0 %vm639_vm4, %v629_v20  ;;  %2493 = vmatmul.mubr.msk.f32.gmra.mrb[30].mxu1 %vm639_vm4, %v2050_v21  ;;  %v2158_v20 = vld [vmem:[%s3147_s12 + $0x300] sm:$0xff] }
  0x9b   : > { %2400 = vmatprep.mubr.msk.f32.mxu0 %vm2831_vm0, %v2832_v42  ;;  %2495 = vmatprep.mubr.msk.f32.mxu1 %vm2831_vm0, %v2832_v42  ;;  %v2108_v21 = vld [vmem:[%s3147_s12 + $0x240] sm:$0xff] }
  0x9e   : > { %2401 = vmatmul.mubr.msk.f32.gmra.mrb[32].mxu0 %vm639_vm4, %v630_v22  ;;  %2496 = vmatmul.mubr.msk.f32.gmra.mrb[32].mxu1 %vm639_vm4, %v2051_v23  ;;  %v2159_v22 = vld [vmem:[%s3147_s12 + $0x308] sm:$0xff] }
  0x9f   : > { %2403 = vmatprep.mubr.msk.f32.mxu0 %vm2831_vm0, %v2832_v42  ;;  %2498 = vmatprep.mubr.msk.f32.mxu1 %vm2831_vm0, %v2832_v42  ;;  %v2109_v23 = vld [vmem:[%s3147_s12 + $0x248] sm:$0xff] }
  0xa2   : > { %2404 = vmatmul.mubr.msk.f32.gmra.mrb[34].mxu0 %vm639_vm4, %v631_v24  ;;  %2499 = vmatmul.mubr.msk.f32.gmra.mrb[34].mxu1 %vm639_vm4, %v2052_v25  ;;  %v2160_v24 = vld [vmem:[%s3147_s12 + $0x310] sm:$0xff] }
  0xa3   : > { %2406 = vmatprep.mubr.msk.f32.mxu0 %vm2831_vm0, %v2832_v42  ;;  %2501 = vmatprep.mubr.msk.f32.mxu1 %vm2831_vm0, %v2832_v42  ;;  %v2110_v25 = vld [vmem:[%s3147_s12 + $0x250] sm:$0xff] }
  0xa6   : > { %2407 = vmatmul.mubr.msk.f32.gmra.mrb[36].mxu0 %vm639_vm4, %v632_v26  ;;  %2502 = vmatmul.mubr.msk.f32.gmra.mrb[36].mxu1 %vm639_vm4, %v2053_v27  ;;  %v2161_v26 = vld [vmem:[%s3147_s12 + $0x318] sm:$0xff] }
  0xa7   : > { %2409 = vmatprep.mubr.msk.f32.mxu0 %vm2831_vm0, %v2832_v42  ;;  %2504 = vmatprep.mubr.msk.f32.mxu1 %vm2831_vm0, %v2832_v42 }
  0xaa   : > { %2410 = vmatmul.mubr.msk.f32.gmra.mrb[38].mxu0 %vm639_vm4, %v633_v28  ;;  %2505 = vmatmul.mubr.msk.f32.gmra.mrb[38].mxu1 %vm639_vm4, %v2054_v29 }
  0xab   : > { %2412 = vmatprep.mubr.msk.f32.mxu0 %vm2831_vm0, %v2832_v42  ;;  %2507 = vmatprep.mubr.msk.f32.mxu1 %vm2831_vm0, %v2832_v42 }
  0xae   : > { %2413 = vmatmul.mubr.msk.f32.gmra.mrb[40].mxu0 %vm639_vm4, %v634_v30  ;;  %2508 = vmatmul.mubr.msk.f32.gmra.mrb[40].mxu1 %vm639_vm4, %v2055_v31 }
  0xaf   : > { %2415 = vmatprep.mubr.msk.f32.mxu0 %vm2831_vm0, %v2832_v42  ;;  %2510 = vmatprep.mubr.msk.f32.mxu1 %vm2831_vm0, %v2832_v42 }
  0xb2   : > { %2416 = vmatmul.mubr.msk.f32.gmra.mrb[42].mxu0 %vm639_vm4, %v635_v32  ;;  %2511 = vmatmul.mubr.msk.f32.gmra.mrb[42].mxu1 %vm639_vm4, %v2056_v33 }
  0xb3   : > { %2418 = vmatprep.mubr.msk.f32.mxu0 %vm2831_vm0, %v2832_v42  ;;  %2513 = vmatprep.mubr.msk.f32.mxu1 %vm2831_vm0, %v2832_v42 }
  0xb6   : > { %2419 = vmatmul.mubr.msk.f32.gmra.mrb[44].mxu0 %vm639_vm4, %v636_v34  ;;  %2514 = vmatmul.mubr.msk.f32.gmra.mrb[44].mxu1 %vm639_vm4, %v2057_v35 }
  0xb7   : > { %2421 = vmatprep.mubr.msk.f32.mxu0 %vm2831_vm0, %v2832_v42  ;;  %2516 = vmatprep.mubr.msk.f32.mxu1 %vm2831_vm0, %v2832_v42 }
  0xba   : > { %2422 = vmatmul.mubr.msk.f32.gmra.mrb[46].mxu0 %vm639_vm4, %v637_v36  ;;  %2517 = vmatmul.mubr.msk.f32.gmra.mrb[46].mxu1 %vm639_vm4, %v2058_v37 }
  0xbb   : > { %2424 = vmatprep.mubr.msk.f32.mxu0 %vm2831_vm0, %v2832_v42  ;;  %2519 = vmatprep.mubr.msk.f32.mxu1 %vm2831_vm0, %v2832_v42 }
  0xbe   : > { %2425 = vmatmul.mubr.msk.f32.gmra.mrb[48].mxu0 %vm639_vm4, %v638_v38  ;;  %2520 = vmatmul.mubr.msk.f32.gmra.mrb[48].mxu1 %vm639_vm4, %v2059_v39 }
  0xbf   : > { %2542 = vmatprep.mubr.msk.f32.mxu0 %vm2831_vm0, %v2832_v42  ;;  %2637 = vmatprep.mubr.msk.f32.mxu1 %vm2831_vm0, %v2832_v42 }
  0xc2   : > { %2543 = vmatmul.mubr.msk.f32.vlgmr.msra.gmra.mrb[50].mxu0 %vm639_vm4, %v2086_v40  ;;  %2638 = vmatmul.mubr.msk.f32.vlgmr.msra.gmra.mrb[50].mxu1 %vm639_vm4, %v2137_v41 }
  0xc3   : > { %2545 = vmatprep.mubr.msk.f32.mxu0 %vm2831_vm0, %v2832_v42  ;;  %2640 = vmatprep.mubr.msk.f32.mxu1 %vm2831_vm0, %v2832_v42 }
  0xc6   : > { %2546 = vmatmul.mubr.msk.f32.gmra.mrb[52].mxu0 %vm639_vm4, %v2087_v43  ;;  %2641 = vmatmul.mubr.msk.f32.gmra.mrb[52].mxu1 %vm639_vm4, %v2138_v44 }
  0xc7   : > { %2548 = vmatprep.mubr.msk.f32.mxu0 %vm2831_vm0, %v2832_v42  ;;  %2643 = vmatprep.mubr.msk.f32.mxu1 %vm2831_vm0, %v2832_v42 }
  0xca   : > { %2549 = vmatmul.mubr.msk.f32.gmra.mrb[54].mxu0 %vm639_vm4, %v2088_v45  ;;  %2644 = vmatmul.mubr.msk.f32.gmra.mrb[54].mxu1 %vm639_vm4, %v2139_v46 }
  0xcb   : > { %2551 = vmatprep.mubr.msk.f32.mxu0 %vm2831_vm0, %v2832_v42  ;;  %2646 = vmatprep.mubr.msk.f32.mxu1 %vm2831_vm0, %v2832_v42 }
  0xce   : > { %2552 = vmatmul.mubr.msk.f32.gmra.mrb[56].mxu0 %vm639_vm4, %v2089_v47  ;;  %2647 = vmatmul.mubr.msk.f32.gmra.mrb[56].mxu1 %vm639_vm4, %v2140_v48 }
  0xcf   : > { %2554 = vmatprep.mubr.msk.f32.mxu0 %vm2831_vm0, %v2832_v42  ;;  %2649 = vmatprep.mubr.msk.f32.mxu1 %vm2831_vm0, %v2832_v42 }
  0xd2   : > { %2555 = vmatmul.mubr.msk.f32.gmra.mrb[58].mxu0 %vm639_vm4, %v2090_v49  ;;  %2650 = vmatmul.mubr.msk.f32.gmra.mrb[58].mxu1 %vm639_vm4, %v2141_v50 }
  0xd3   : > { %2557 = vmatprep.mubr.msk.f32.mxu0 %vm2831_vm0, %v2832_v42  ;;  %2652 = vmatprep.mubr.msk.f32.mxu1 %vm2831_vm0, %v2832_v42 }
  0xd6   : > { %2558 = vmatmul.mubr.msk.f32.gmra.mrb[60].mxu0 %vm639_vm4, %v2091_v51  ;;  %2653 = vmatmul.mubr.msk.f32.gmra.mrb[60].mxu1 %vm639_vm4, %v2142_v52 }
  0xd7   : > { %2560 = vmatprep.mubr.msk.f32.mxu0 %vm2831_vm0, %v2832_v42  ;;  %2655 = vmatprep.mubr.msk.f32.mxu1 %vm2831_vm0, %v2832_v42 }
  0xda   : > { %2561 = vmatmul.mubr.msk.f32.gmra.mrb[62].mxu0 %vm639_vm4, %v2092_v53  ;;  %2656 = vmatmul.mubr.msk.f32.gmra.mrb[62].mxu1 %vm639_vm4, %v2143_v54 }
  0xdb   : > { %2563 = vmatprep.mubr.msk.f32.mxu0 %vm2831_vm0, %v2832_v42  ;;  %2658 = vmatprep.mubr.msk.f32.mxu1 %vm2831_vm0, %v2832_v42 }
  0xde   : > { %2564 = vmatmul.mubr.msk.f32.gmra.mrb[64].mxu0 %vm639_vm4, %v2093_v55  ;;  %2659 = vmatmul.mubr.msk.f32.gmra.mrb[64].mxu1 %vm639_vm4, %v2144_v56 }
  0xdf   : > { %2566 = vmatprep.mubr.msk.f32.mxu0 %vm2831_vm0, %v2832_v42  ;;  %2661 = vmatprep.mubr.msk.f32.mxu1 %vm2831_vm0, %v2832_v42 }
  0xe2   : > { %2567 = vmatmul.mubr.msk.f32.gmra.mrb[66].mxu0 %vm639_vm4, %v2094_v57  ;;  %2662 = vmatmul.mubr.msk.f32.gmra.mrb[66].mxu1 %vm639_vm4, %v2145_v58 }
  0xe3   : > { %2569 = vmatprep.mubr.msk.f32.mxu0 %vm2831_vm0, %v2832_v42  ;;  %2664 = vmatprep.mubr.msk.f32.mxu1 %vm2831_vm0, %v2832_v42 }
  0xe6   : > { %2570 = vmatmul.mubr.msk.f32.gmra.mrb[68].mxu0 %vm639_vm4, %v2095_v59  ;;  %2665 = vmatmul.mubr.msk.f32.gmra.mrb[68].mxu1 %vm639_vm4, %v2146_v60 }
  0xe7   : > { %2572 = vmatprep.mubr.msk.f32.mxu0 %vm2831_vm0, %v2832_v42  ;;  %2667 = vmatprep.mubr.msk.f32.mxu1 %vm2831_vm0, %v2832_v42 }
  0xea   : > { %2573 = vmatmul.mubr.msk.f32.gmra.mrb[70].mxu0 %vm639_vm4, %v2096_v61  ;;  %2668 = vmatmul.mubr.msk.f32.gmra.mrb[70].mxu1 %vm639_vm4, %v2147_v62 }
  0xeb   : > { %2575 = vmatprep.mubr.msk.f32.mxu0 %vm2831_vm0, %v2832_v42  ;;  %2670 = vmatprep.mubr.msk.f32.mxu1 %vm2831_vm0, %v2832_v42 }
  0xee   : > { %2576 = vmatmul.mubr.msk.f32.gmra.mrb[72].mxu0 %vm639_vm4, %v2097_v63  ;;  %2671 = vmatmul.mubr.msk.f32.gmra.mrb[72].mxu1 %vm639_vm4, %v2148_v0 }
  0xef   : > { %2578 = vmatprep.mubr.msk.f32.mxu0 %vm2831_vm0, %v2832_v42  ;;  %2673 = vmatprep.mubr.msk.f32.mxu1 %vm2831_vm0, %v2832_v42 }
  0xf2   : > { %2579 = vmatmul.mubr.msk.f32.gmra.mrb[74].mxu0 %vm639_vm4, %v2098_v1  ;;  %2674 = vmatmul.mubr.msk.f32.gmra.mrb[74].mxu1 %vm639_vm4, %v2149_v2 }
  0xf3   : > { %2581 = vmatprep.mubr.msk.f32.mxu0 %vm2831_vm0, %v2832_v42  ;;  %2676 = vmatprep.mubr.msk.f32.mxu1 %vm2831_vm0, %v2832_v42 }
  0xf6   : > { %2582 = vmatmul.mubr.msk.f32.gmra.mrb[76].mxu0 %vm639_vm4, %v2099_v3  ;;  %2677 = vmatmul.mubr.msk.f32.gmra.mrb[76].mxu1 %vm639_vm4, %v2150_v4 }
  0xf7   : > { %2584 = vmatprep.mubr.msk.f32.mxu0 %vm2831_vm0, %v2832_v42  ;;  %2679 = vmatprep.mubr.msk.f32.mxu1 %vm2831_vm0, %v2832_v42 }
  0xfa   : > { %2585 = vmatmul.mubr.msk.f32.gmra.mrb[78].mxu0 %vm639_vm4, %v2100_v5  ;;  %2680 = vmatmul.mubr.msk.f32.gmra.mrb[78].mxu1 %vm639_vm4, %v2151_v6 }
  0xfb   : > { %2587 = vmatprep.mubr.msk.f32.mxu0 %vm2831_vm0, %v2832_v42  ;;  %2682 = vmatprep.mubr.msk.f32.mxu1 %vm2831_vm0, %v2832_v42 }
  0xfe   : > { %2588 = vmatmul.mubr.msk.f32.gmra.mrb[80].mxu0 %vm639_vm4, %v2101_v7  ;;  %2683 = vmatmul.mubr.msk.f32.gmra.mrb[80].mxu1 %vm639_vm4, %v2152_v8 }
  0xff   : > { %2590 = vmatprep.mubr.msk.f32.mxu0 %vm2831_vm0, %v2832_v42  ;;  %2685 = vmatprep.mubr.msk.f32.mxu1 %vm2831_vm0, %v2832_v42 }
 0x102   : > { %2591 = vmatmul.mubr.msk.f32.gmra.mrb[82].mxu0 %vm639_vm4, %v2102_v9  ;;  %2686 = vmatmul.mubr.msk.f32.gmra.mrb[82].mxu1 %vm639_vm4, %v2153_v10 }
 0x103   : > { %2593 = vmatprep.mubr.msk.f32.mxu0 %vm2831_vm0, %v2832_v42  ;;  %2688 = vmatprep.mubr.msk.f32.mxu1 %vm2831_vm0, %v2832_v42 }
 0x106   : > { %2594 = vmatmul.mubr.msk.f32.gmra.mrb[84].mxu0 %vm639_vm4, %v2103_v11  ;;  %2689 = vmatmul.mubr.msk.f32.gmra.mrb[84].mxu1 %vm639_vm4, %v2154_v12 }
 0x107   : > { %2596 = vmatprep.mubr.msk.f32.mxu0 %vm2831_vm0, %v2832_v42  ;;  %2691 = vmatprep.mubr.msk.f32.mxu1 %vm2831_vm0, %v2832_v42 }
 0x10a   : > { %2597 = vmatmul.mubr.msk.f32.gmra.mrb[86].mxu0 %vm639_vm4, %v2104_v13  ;;  %2692 = vmatmul.mubr.msk.f32.gmra.mrb[86].mxu1 %vm639_vm4, %v2155_v14 }
 0x10b   : > { %2599 = vmatprep.mubr.msk.f32.mxu0 %vm2831_vm0, %v2832_v42  ;;  %2694 = vmatprep.mubr.msk.f32.mxu1 %vm2831_vm0, %v2832_v42 }
 0x10e   : > { %2600 = vmatmul.mubr.msk.f32.gmra.mrb[88].mxu0 %vm639_vm4, %v2105_v15  ;;  %2695 = vmatmul.mubr.msk.f32.gmra.mrb[88].mxu1 %vm639_vm4, %v2156_v16 }
 0x10f   : > { %2602 = vmatprep.mubr.msk.f32.mxu0 %vm2831_vm0, %v2832_v42  ;;  %2697 = vmatprep.mubr.msk.f32.mxu1 %vm2831_vm0, %v2832_v42 }
 0x112   : > { %2603 = vmatmul.mubr.msk.f32.gmra.mrb[90].mxu0 %vm639_vm4, %v2106_v17  ;;  %2698 = vmatmul.mubr.msk.f32.gmra.mrb[90].mxu1 %vm639_vm4, %v2157_v18 }
 0x113   : > { %2605 = vmatprep.mubr.msk.f32.mxu0 %vm2831_vm0, %v2832_v42  ;;  %2700 = vmatprep.mubr.msk.f32.mxu1 %vm2831_vm0, %v2832_v42 }
 0x116   : > { %2606 = vmatmul.mubr.msk.f32.gmra.mrb[92].mxu0 %vm639_vm4, %v2107_v19  ;;  %2701 = vmatmul.mubr.msk.f32.gmra.mrb[92].mxu1 %vm639_vm4, %v2158_v20 }
 0x117   : > { %2608 = vmatprep.mubr.msk.f32.mxu0 %vm2831_vm0, %v2832_v42  ;;  %2703 = vmatprep.mubr.msk.f32.mxu1 %vm2831_vm0, %v2832_v42 }
 0x11a   : > { %2609 = vmatmul.mubr.msk.f32.gmra.mrb[94].mxu0 %vm639_vm4, %v2108_v21  ;;  %2704 = vmatmul.mubr.msk.f32.gmra.mrb[94].mxu1 %vm639_vm4, %v2159_v22 }
 0x11b   : > { %2611 = vmatprep.mubr.msk.f32.mxu0 %vm2831_vm0, %v2832_v42  ;;  %2706 = vmatprep.mubr.msk.f32.mxu1 %vm2831_vm0, %v2832_v42 }
 0x11e   : > { %2612 = vmatmul.mubr.msk.f32.gmra.mrb[96].mxu0 %vm639_vm4, %v2109_v23  ;;  %2707 = vmatmul.mubr.msk.f32.gmra.mrb[96].mxu1 %vm639_vm4, %v2160_v24 }
 0x11f   : > { %2614 = vmatprep.mubr.msk.f32.mxu0 %vm2831_vm0, %v2832_v42  ;;  %2709 = vmatprep.mubr.msk.f32.mxu1 %vm2831_vm0, %v2832_v42 }
 0x122   : > { %2615 = vmatmul.mubr.msk.f32.gmra.mrb[98].mxu0 %vm639_vm4, %v2110_v25  ;;  %2710 = vmatmul.mubr.msk.f32.gmra.mrb[98].mxu1 %vm639_vm4, %v2161_v26 }
 0x131   : > { %v3559_v27 = vpop.f32.mrb[0].mxu0  ;;  %v3561_v28 = vpop.f32.mrb[0].mxu1 }
 0x132   : > { %v2354_v29 = vpop.f32.mrb[1].mxu0  ;;  %v1200_v30 = vmax.f32 %v3559_v27, %v3561_v28  ;;  %v2449_v31 = vpop.f32.mrb[1].mxu1 }
 0x135   : > { %v3565_v32 = vpop.f32.mrb[2].mxu0  ;;  %v3567_v33 = vpop.f32.mrb[2].mxu1 }
 0x136   : > { %v2357_v34 = vpop.f32.mrb[3].mxu0  ;;  %v1201_v42 = vmax.f32 %v3565_v32, %v3567_v33  ;;  %v2452_v35 = vpop.f32.mrb[3].mxu1 }
 0x139   : > { %v3571_v36 = vpop.f32.mrb[4].mxu0  ;;  %v3573_v37 = vpop.f32.mrb[4].mxu1 }
 0x13a   : > { %v2360_v38 = vpop.f32.mrb[5].mxu0  ;;  %v2455_v40 = vpop.f32.mrb[5].mxu1  ;;  %v3887_v32 = vmax.f32 %v3571_v36, %v3573_v37 }
 0x13d   : > { %v3577_v41 = vpop.f32.mrb[6].mxu0  ;;  %v3579_v43 = vpop.f32.mrb[6].mxu1 }
 0x13e   : > { %v2363_v44 = vpop.f32.mrb[7].mxu0  ;;  %v2458_v46 = vpop.f32.mrb[7].mxu1 }
 0x141   : > { %v3583_v47 = vpop.f32.mrb[8].mxu0  ;;  %v3585_v48 = vpop.f32.mrb[8].mxu1 }
 0x142   : > { %v2366_v49 = vpop.f32.mrb[9].mxu0  ;;  %v2461_v51 = vpop.f32.mrb[9].mxu1 }
 0x145   : > { %v3589_v52 = vpop.f32.mrb[10].mxu0  ;;  %v3591_v53 = vpop.f32.mrb[10].mxu1 }
 0x146   : > { %v2369_v54 = vpop.f32.mrb[11].mxu0  ;;  %v2464_v56 = vpop.f32.mrb[11].mxu1 }
 0x149   : > { %v3595_v57 = vpop.f32.mrb[12].mxu0  ;;  %v3597_v58 = vpop.f32.mrb[12].mxu1 }
 0x14a   : > { %v2372_v59 = vpop.f32.mrb[13].mxu0  ;;  %v2467_v61 = vpop.f32.mrb[13].mxu1 }
 0x14d   : > { %v3601_v62 = vpop.f32.mrb[14].mxu0  ;;  %v3603_v63 = vpop.f32.mrb[14].mxu1 }
 0x14e   : > { %v2375_v0 = vpop.f32.mrb[15].mxu0  ;;  %v2470_v2 = vpop.f32.mrb[15].mxu1 }
 0x151   : > { %v3607_v3 = vpop.f32.mrb[16].mxu0  ;;  %v3609_v4 = vpop.f32.mrb[16].mxu1 }
 0x152   : > { %v2378_v5 = vpop.f32.mrb[17].mxu0  ;;  %v2473_v7 = vpop.f32.mrb[17].mxu1 }
 0x155   : > { %v3613_v8 = vpop.f32.mrb[18].mxu0  ;;  %v3615_v9 = vpop.f32.mrb[18].mxu1 }
 0x156   : > { %v2381_v10 = vpop.f32.mrb[19].mxu0  ;;  %v2476_v12 = vpop.f32.mrb[19].mxu1 }
 0x159   : > { %v3619_v13 = vpop.f32.mrb[20].mxu0  ;;  %v3621_v14 = vpop.f32.mrb[20].mxu1 }
 0x15a   : > { %v2384_v15 = vpop.f32.mrb[21].mxu0  ;;  %v2479_v17 = vpop.f32.mrb[21].mxu1 }
 0x15d   : > { %v3625_v18 = vpop.f32.mrb[22].mxu0  ;;  %v3627_v19 = vpop.f32.mrb[22].mxu1 }
 0x15e   : > { %v2387_v20 = vpop.f32.mrb[23].mxu0  ;;  %v2482_v22 = vpop.f32.mrb[23].mxu1 }
 0x161   : > { %v3631_v23 = vpop.f32.mrb[24].mxu0  ;;  %v3633_v24 = vpop.f32.mrb[24].mxu1 }
 0x162   : > { %v2390_v25 = vpop.f32.mrb[25].mxu0  ;;  %v2485_v29 = vpop.f32.mrb[25].mxu1 }
 0x165   : > { %v3637_v31 = vpop.f32.mrb[26].mxu0  ;;  %v3639_v34 = vpop.f32.mrb[26].mxu1 }
 0x166   : > { %v2393_v35 = vpop.f32.mrb[27].mxu0  ;;  %v2488_v40 = vpop.f32.mrb[27].mxu1 }
 0x169   : > { %v3643_v44 = vpop.f32.mrb[28].mxu0  ;;  %v3645_v46 = vpop.f32.mrb[28].mxu1 }
 0x16a   : > { %v2396_v49 = vpop.f32.mrb[29].mxu0  ;;  %v2491_v54 = vpop.f32.mrb[29].mxu1 }
 0x16d   : > { %v3649_v56 = vpop.f32.mrb[30].mxu0  ;;  %v3651_v59 = vpop.f32.mrb[30].mxu1 }
 0x16e   : > { %v2399_v61 = vpop.f32.mrb[31].mxu0  ;;  %v2494_v2 = vpop.f32.mrb[31].mxu1 }
 0x171   : > { %v3655_v5 = vpop.f32.mrb[32].mxu0  ;;  %v3657_v7 = vpop.f32.mrb[32].mxu1 }
 0x172   : > { %v2402_v10 = vpop.f32.mrb[33].mxu0  ;;  %v2497_v15 = vpop.f32.mrb[33].mxu1 }
 0x175   : > { %v3661_v17 = vpop.f32.mrb[34].mxu0  ;;  %v3663_v20 = vpop.f32.mrb[34].mxu1 }
 0x176   : > { %v2405_v22 = vpop.f32.mrb[35].mxu0  ;;  %v2500_v29 = vpop.f32.mrb[35].mxu1 }
 0x179   : > { %v3667_v35 = vpop.f32.mrb[36].mxu0  ;;  %v3669_v40 = vpop.f32.mrb[36].mxu1 }
 0x17a   : > { %v2408_v49 = vpop.f32.mrb[37].mxu0  ;;  %v2503_v61 = vpop.f32.mrb[37].mxu1 }
 0x17d   : > { %v3673_v2 = vpop.f32.mrb[38].mxu0  ;;  %v3675_v10 = vpop.f32.mrb[38].mxu1 }
 0x17e   : > { %v2411_v15 = vpop.f32.mrb[39].mxu0  ;;  %v2506_v12 = vpop.f32.mrb[39].mxu1 }
 0x181   : > { %v3679_v29 = vpop.f32.mrb[40].mxu0  ;;  %v3681_v25 = vpop.f32.mrb[40].mxu1 }
 0x182   : > { %v2414_v0 = vpop.f32.mrb[41].mxu0  ;;  %v2509_v54 = vpop.f32.mrb[41].mxu1 }
 0x185   : > { %v3685_v61 = vpop.f32.mrb[42].mxu0  ;;  %v3687_v51 = vpop.f32.mrb[42].mxu1 }
 0x186   : > { %v2417_v38 = vpop.f32.mrb[43].mxu0  ;;  %v2512_v22 = vpop.f32.mrb[43].mxu1 }
 0x189   : > { %v3691_v12 = vpop.f32.mrb[44].mxu0  ;;  %v3693_v26 = vpop.f32.mrb[44].mxu1 }
 0x18a   : > { %v2420_v21 = vpop.f32.mrb[45].mxu0  ;;  %v2515_v16 = vpop.f32.mrb[45].mxu1 }
 0x18d   : > { %v3699_v54 = vpop.f32.mrb[46].mxu0  ;;  %v3701_v49 = vpop.f32.mrb[46].mxu1 }
 0x18e   : > { %v2423_v38 = vpop.f32.mrb[47].mxu0  ;;  %v2518_v22 = vpop.f32.mrb[47].mxu1 }
 0x18f   : > { %v3717_v22 = vld [vmem:[%s3883_s2] ss:$0 sm:$0xff] }
 0x191   : > { %v3705_v11 = vpop.f32.mrb[48].mxu0  ;;  %v3707_v6 = vpop.f32.mrb[48].mxu1 }
 0x192   : > { %v2426_v21 = vpop.f32.mrb[49].mxu0  ;;  %v2521_v0 = vpop.f32.mrb[49].mxu1 }
 0x195   : > { %v1392_v1 = vpop.f32.mrb[50].mxu0  ;;  %v1708_v60 = vpop.f32.mrb[50].mxu1 }
 0x196   : > { %v1516_v38 = vmax.f32 %v1200_v30, %v1392_v1  ;;  %v2544_v55 = vpop.f32.mrb[51].mxu0  ;;  %v2639_v15 = vpop.f32.mrb[51].mxu1 }
 0x198   : > { %v1832_v21 = vmax.f32 %v1516_v38, %v1708_v60 }
 0x199   : > { %v1397_v50 = vpop.f32.mrb[52].mxu0  ;;  %v1713_v45 = vpop.f32.mrb[52].mxu1 }
 0x19a   : > { %v1864_v0 = vadd.f32 %v3717_v22, %v1832_v21  ;;  %v1517_v16 = vmax.f32 %v1201_v42, %v1397_v50  ;;  %v2547_v39 = vpop.f32.mrb[53].mxu0  ;;  %v2642_v27 = vpop.f32.mrb[53].mxu1 }
 0x19c   : > { %v1889_v28 = vmax.f32 %v1864_v0, 0.0  ;;  %v1833_v30 = vmax.f32 %v1517_v16, %v1713_v45  ;;  %v3888_v16 = vmax.f32 %v3577_v41, %v3579_v43 }
 0x19d   : > { %v1402_v55 = vpop.f32.mrb[54].mxu0  ;;  %v1718_v60 = vpop.f32.mrb[54].mxu1 }
 0x19e   : > { %1915 = vst.msk [vmem:[%s3726_s5] sm:$0xff] %vm1914_vm5, %v1889_v28  ;;  %v1865_v1 = vadd.f32 %v3717_v22, %v1833_v30  ;;  %v1518_v33 = vmax.f32 %v3887_v32, %v1402_v55  ;;  %v2550_v42 = vpop.f32.mrb[55].mxu0  ;;  %v2645_v39 = vpop.f32.mrb[55].mxu1 }
 0x1a0   : > { %v1890_v50 = vmax.f32 %v1865_v1, 0.0  ;;  %v1834_v15 = vmax.f32 %v1518_v33, %v1718_v60  ;;  %v3889_v1 = vmax.f32 %v3583_v47, %v3585_v48 }
 0x1a1   : > { %v1407_v38 = vpop.f32.mrb[56].mxu0  ;;  %v1723_v21 = vpop.f32.mrb[56].mxu1 }
 0x1a2   : > { %1916 = vst.msk [vmem:[%s3726_s5 + $0x8] sm:$0xff] %vm1914_vm5, %v1890_v50  ;;  %v1866_v45 = vadd.f32 %v3717_v22, %v1834_v15  ;;  %v1519_v0 = vmax.f32 %v3888_v16, %v1407_v38  ;;  %v2553_v27 = vpop.f32.mrb[57].mxu0  ;;  %v2648_v28 = vpop.f32.mrb[57].mxu1  ;;  %v3890_v38 = vmax.f32 %v3589_v52, %v3591_v53 }
 0x1a4   : > { %v1891_v36 = vmax.f32 %v1866_v45, 0.0  ;;  %v1835_v37 = vmax.f32 %v1519_v0, %v1723_v21 }
 0x1a5   : > { %v1412_v30 = vpop.f32.mrb[58].mxu0  ;;  %v1728_v55 = vpop.f32.mrb[58].mxu1 }
 0x1a6   : > { %1917 = vst.msk [vmem:[%s3726_s5 + $0x10] sm:$0xff] %vm1914_vm5, %v1891_v36  ;;  %v1867_v60 = vadd.f32 %v3717_v22, %v1835_v37  ;;  %v1520_v32 = vmax.f32 %v3889_v1, %v1412_v30  ;;  %v2556_v33 = vpop.f32.mrb[59].mxu0  ;;  %v2651_v42 = vpop.f32.mrb[59].mxu1  ;;  %v3891_v36 = vmax.f32 %v3595_v57, %v3597_v58 }
 0x1a7   : > { %v3892_v33 = vmax.f32 %v3601_v62, %v3603_v63 }
 0x1a8   : > { %v1892_v41 = vmax.f32 %v1867_v60, 0.0  ;;  %v1836_v43 = vmax.f32 %v1520_v32, %v1728_v55 }
 0x1a9   : > { %v1417_v39 = vpop.f32.mrb[60].mxu0  ;;  %v1733_v50 = vpop.f32.mrb[60].mxu1 }
 0x1aa   : > { %1918 = vst.msk [vmem:[%s3726_s5 + $0x18] sm:$0xff] %vm1914_vm5, %v1892_v41  ;;  %v1868_v15 = vadd.f32 %v3717_v22, %v1836_v43  ;;  %v1521_v21 = vmax.f32 %v3890_v38, %v1417_v39  ;;  %v2559_v45 = vpop.f32.mrb[61].mxu0  ;;  %v2654_v16 = vpop.f32.mrb[61].mxu1  ;;  %v3893_v38 = vmax.f32 %v3607_v3, %v3609_v4 }
 0x1ac   : > { %v1893_v47 = vmax.f32 %v1868_v15, 0.0  ;;  %v1837_v48 = vmax.f32 %v1521_v21, %v1733_v50 }
 0x1ad   : > { %v1422_v0 = vpop.f32.mrb[62].mxu0  ;;  %v1738_v27 = vpop.f32.mrb[62].mxu1 }
 0x1ae   : > { %1919 = vst.msk [vmem:[%s3726_s5 + $0x20] sm:$0xff] %vm1914_vm5, %v1893_v47  ;;  %v1869_v28 = vadd.f32 %v3717_v22, %v1837_v48  ;;  %v1522_v37 = vmax.f32 %v3891_v36, %v1422_v0  ;;  %v2562_v30 = vpop.f32.mrb[63].mxu0  ;;  %v2657_v55 = vpop.f32.mrb[63].mxu1 }
 0x1b0   : > { %v1894_v52 = vmax.f32 %v1869_v28, 0.0  ;;  %v1838_v53 = vmax.f32 %v1522_v37, %v1738_v27  ;;  %v3894_v27 = vmax.f32 %v3613_v8, %v3615_v9 }
 0x1b1   : > { %v1427_v60 = vpop.f32.mrb[64].mxu0  ;;  %v1743_v1 = vpop.f32.mrb[64].mxu1 }
 0x1b2   : > { %1920 = vst.msk [vmem:[%s3726_s5 + $0x28] sm:$0xff] %vm1914_vm5, %v1894_v52  ;;  %v1870_v32 = vadd.f32 %v3717_v22, %v1838_v53  ;;  %v1523_v42 = vmax.f32 %v3892_v33, %v1427_v60  ;;  %v2565_v41 = vpop.f32.mrb[65].mxu0  ;;  %v2660_v43 = vpop.f32.mrb[65].mxu1  ;;  %v3895_v53 = vmax.f32 %v3619_v13, %v3621_v14 }
 0x1b3   : > { %v3896_v43 = vmax.f32 %v3625_v18, %v3627_v19 }
 0x1b4   : > { %v1895_v57 = vmax.f32 %v1870_v32, 0.0  ;;  %v1839_v58 = vmax.f32 %v1523_v42, %v1743_v1 }
 0x1b5   : > { %v1432_v39 = vpop.f32.mrb[66].mxu0  ;;  %v1748_v50 = vpop.f32.mrb[66].mxu1 }
 0x1b6   : > { %1921 = vst.msk [vmem:[%s3726_s5 + $0x30] sm:$0xff] %vm1914_vm5, %v1895_v57  ;;  %v1871_v15 = vadd.f32 %v3717_v22, %v1839_v58  ;;  %v1524_v21 = vmax.f32 %v3893_v38, %v1432_v39  ;;  %v2568_v45 = vpop.f32.mrb[67].mxu0  ;;  %v2663_v16 = vpop.f32.mrb[67].mxu1 }
 0x1b8   : > { %v1896_v62 = vmax.f32 %v1871_v15, 0.0  ;;  %v1840_v63 = vmax.f32 %v1524_v21, %v1748_v50  ;;  %v3897_v21 = vmax.f32 %v3631_v23, %v3633_v24 }
 0x1b9   : > { %v1437_v47 = vpop.f32.mrb[68].mxu0  ;;  %v1753_v48 = vpop.f32.mrb[68].mxu1 }
 0x1ba   : > { %1922 = vst.msk [vmem:[%s3726_s5 + $0x38] sm:$0xff] %vm1914_vm5, %v1896_v62  ;;  %v1872_v0 = vadd.f32 %v3717_v22, %v1840_v63  ;;  %v1525_v28 = vmax.f32 %v3894_v27, %v1437_v47  ;;  %v2571_v36 = vpop.f32.mrb[69].mxu0  ;;  %v2666_v37 = vpop.f32.mrb[69].mxu1 }
 0x1bc   : > { %v1897_v3 = vmax.f32 %v1872_v0, 0.0  ;;  %v1841_v4 = vmax.f32 %v1525_v28, %v1753_v48  ;;  %v3898_v0 = vmax.f32 %v3637_v31, %v3639_v34 }
 0x1bd   : > { %v1442_v30 = vpop.f32.mrb[70].mxu0  ;;  %v1758_v55 = vpop.f32.mrb[70].mxu1 }
 0x1be   : > { %1923 = vst.msk [vmem:[%s3726_s5 + $0x40] sm:$0xff] %vm1914_vm5, %v1897_v3  ;;  %v1873_v52 = vadd.f32 %v3717_v22, %v1841_v4  ;;  %v1526_v60 = vmax.f32 %v3895_v53, %v1442_v30  ;;  %v2574_v1 = vpop.f32.mrb[71].mxu0  ;;  %v2669_v32 = vpop.f32.mrb[71].mxu1  ;;  %v3899_v30 = vmax.f32 %v3643_v44, %v3645_v46 }
 0x1c0   : > { %v1898_v8 = vmax.f32 %v1873_v52, 0.0  ;;  %v1842_v9 = vmax.f32 %v1526_v60, %v1758_v55 }
 0x1c1   : > { %v1447_v33 = vpop.f32.mrb[72].mxu0  ;;  %v1763_v42 = vpop.f32.mrb[72].mxu1 }
 0x1c2   : > { %1924 = vst.msk [vmem:[%s3726_s5 + $0x48] sm:$0xff] %vm1914_vm5, %v1898_v8  ;;  %v1874_v41 = vadd.f32 %v3717_v22, %v1842_v9  ;;  %v1527_v57 = vmax.f32 %v3896_v43, %v1447_v33  ;;  %v2577_v58 = vpop.f32.mrb[73].mxu0  ;;  %v2672_v39 = vpop.f32.mrb[73].mxu1  ;;  %v3900_v8 = vmax.f32 %v3649_v56, %v3651_v59 }
 0x1c3   : > { %v3901_v58 = vmax.f32 %v3655_v5, %v3657_v7 }
 0x1c4   : > { %v1899_v13 = vmax.f32 %v1874_v41, 0.0  ;;  %v1843_v14 = vmax.f32 %v1527_v57, %v1763_v42 }
 0x1c5   : > { %v1452_v50 = vpop.f32.mrb[74].mxu0  ;;  %v1768_v15 = vpop.f32.mrb[74].mxu1 }
 0x1c6   : > { %1925 = vst.msk [vmem:[%s3726_s5 + $0x50] sm:$0xff] %vm1914_vm5, %v1899_v13  ;;  %v1875_v38 = vadd.f32 %v3717_v22, %v1843_v14  ;;  %v1528_v45 = vmax.f32 %v3897_v21, %v1452_v50  ;;  %v2580_v16 = vpop.f32.mrb[75].mxu0  ;;  %v2675_v62 = vpop.f32.mrb[75].mxu1  ;;  %v3902_v21 = vmax.f32 %v3661_v17, %v3663_v20 }
 0x1c8   : > { %v1900_v18 = vmax.f32 %v1875_v38, 0.0  ;;  %v1844_v19 = vmax.f32 %v1528_v45, %v1768_v15 }
 0x1c9   : > { %v1457_v63 = vpop.f32.mrb[76].mxu0  ;;  %v1773_v47 = vpop.f32.mrb[76].mxu1 }
 0x1ca   : > { %1926 = vst.msk [vmem:[%s3726_s5 + $0x58] sm:$0xff] %vm1914_vm5, %v1900_v18  ;;  %v1876_v48 = vadd.f32 %v3717_v22, %v1844_v19  ;;  %v1529_v27 = vmax.f32 %v3898_v0, %v1457_v63  ;;  %v2583_v28 = vpop.f32.mrb[77].mxu0  ;;  %v2678_v36 = vpop.f32.mrb[77].mxu1 }
 0x1cc   : > { %v1901_v23 = vmax.f32 %v1876_v48, 0.0  ;;  %v1845_v24 = vmax.f32 %v1529_v27, %v1773_v47  ;;  %v3903_v47 = vmax.f32 %v3667_v35, %v3669_v40 }
 0x1cd   : > { %v1462_v37 = vpop.f32.mrb[78].mxu0  ;;  %v1778_v3 = vpop.f32.mrb[78].mxu1 }
 0x1ce   : > { %1927 = vst.msk [vmem:[%s3726_s5 + $0x60] sm:$0xff] %vm1914_vm5, %v1901_v23  ;;  %v1877_v4 = vadd.f32 %v3717_v22, %v1845_v24  ;;  %v1530_v55 = vmax.f32 %v3899_v30, %v1462_v37  ;;  %v2586_v52 = vpop.f32.mrb[79].mxu0  ;;  %v2681_v53 = vpop.f32.mrb[79].mxu1  ;;  %v3904_v24 = vmax.f32 %v3673_v2, %v3675_v10 }
 0x1cf   : > { %v3905_v53 = vmax.f32 %v3679_v29, %v3681_v25 }
 0x1d0   : > { %v1902_v31 = vmax.f32 %v1877_v4, 0.0  ;;  %v1846_v34 = vmax.f32 %v1530_v55, %v1778_v3 }
 0x1d1   : > { %v1467_v60 = vpop.f32.mrb[80].mxu0  ;;  %v1783_v1 = vpop.f32.mrb[80].mxu1 }
 0x1d2   : > { %1928 = vst.msk [vmem:[%s3726_s5 + $0x68] sm:$0xff] %vm1914_vm5, %v1902_v31  ;;  %v1878_v32 = vadd.f32 %v3717_v22, %v1846_v34  ;;  %v1531_v9 = vmax.f32 %v3900_v8, %v1467_v60  ;;  %v2589_v33 = vpop.f32.mrb[81].mxu0  ;;  %v2684_v42 = vpop.f32.mrb[81].mxu1 }
 0x1d4   : > { %v1903_v44 = vmax.f32 %v1878_v32, 0.0  ;;  %v1847_v46 = vmax.f32 %v1531_v9, %v1783_v1  ;;  %v3906_v9 = vmax.f32 %v3685_v61, %v3687_v51 }
 0x1d5   : > { %v1472_v41 = vpop.f32.mrb[82].mxu0  ;;  %v1788_v43 = vpop.f32.mrb[82].mxu1 }
 0x1d6   : > { %1929 = vst.msk [vmem:[%s3726_s5 + $0x70] sm:$0xff] %vm1914_vm5, %v1903_v44  ;;  %v1879_v57 = vadd.f32 %v3717_v22, %v1847_v46  ;;  %v1532_v39 = vmax.f32 %v3901_v58, %v1472_v41  ;;  %v2592_v13 = vpop.f32.mrb[83].mxu0  ;;  %v2687_v14 = vpop.f32.mrb[83].mxu1 }
 0x1d8   : > { %v1904_v56 = vmax.f32 %v1879_v57, 0.0  ;;  %v1848_v59 = vmax.f32 %v1532_v39, %v1788_v43  ;;  %v3907_v57 = vmax.f32 %v3691_v12, %v3693_v26 }
 0x1d9   : > { %v1477_v50 = vpop.f32.mrb[84].mxu0  ;;  %v1793_v15 = vpop.f32.mrb[84].mxu1 }
 0x1da   : > { %1930 = vst.msk [vmem:[%s3726_s5 + $0x78] sm:$0xff] %vm1914_vm5, %v1904_v56  ;;  %v1880_v38 = vadd.f32 %v3717_v22, %v1848_v59  ;;  %v1533_v45 = vmax.f32 %v3902_v21, %v1477_v50  ;;  %v2595_v16 = vpop.f32.mrb[85].mxu0  ;;  %v2690_v62 = vpop.f32.mrb[85].mxu1  ;;  %v3908_v50 = vmax.f32 %v3699_v54, %v3701_v49 }
 0x1dc   : > { %v1905_v5 = vmax.f32 %v1880_v38, 0.0  ;;  %v1849_v7 = vmax.f32 %v1533_v45, %v1793_v15 }
 0x1dd   : > { %v1482_v18 = vpop.f32.mrb[86].mxu0  ;;  %v1798_v19 = vpop.f32.mrb[86].mxu1 }
 0x1de   : > { %1931 = vst.msk [vmem:[%s3726_s5 + $0x80] sm:$0xff] %vm1914_vm5, %v1905_v5  ;;  %v1881_v63 = vadd.f32 %v3717_v22, %v1849_v7  ;;  %v1534_v48 = vmax.f32 %v3903_v47, %v1482_v18  ;;  %v2598_v0 = vpop.f32.mrb[87].mxu0  ;;  %v2693_v27 = vpop.f32.mrb[87].mxu1  ;;  %v3909_v5 = vmax.f32 %v3705_v11, %v3707_v6 }
 0x1e0   : > { %v1906_v17 = vmax.f32 %v1881_v63, 0.0  ;;  %v1850_v20 = vmax.f32 %v1534_v48, %v1798_v19 }
 0x1e1   : > { %v1487_v28 = vpop.f32.mrb[88].mxu0  ;;  %v1803_v36 = vpop.f32.mrb[88].mxu1 }
 0x1e2   : > { %1932 = vst.msk [vmem:[%s3726_s5 + $0x88] sm:$0xff] %vm1914_vm5, %v1906_v17  ;;  %v1882_v23 = vadd.f32 %v3717_v22, %v1850_v20  ;;  %v1535_v37 = vmax.f32 %v3904_v24, %v1487_v28  ;;  %v2601_v3 = vpop.f32.mrb[89].mxu0  ;;  %v2696_v4 = vpop.f32.mrb[89].mxu1 }
 0x1e4   : > { %v1907_v35 = vmax.f32 %v1882_v23, 0.0  ;;  %v1851_v40 = vmax.f32 %v1535_v37, %v1803_v36 }
 0x1e5   : > { %v1492_v30 = vpop.f32.mrb[90].mxu0  ;;  %v1808_v55 = vpop.f32.mrb[90].mxu1 }
 0x1e6   : > { %1933 = vst.msk [vmem:[%s3726_s5 + $0x90] sm:$0xff] %vm1914_vm5, %v1907_v35  ;;  %v1883_v52 = vadd.f32 %v3717_v22, %v1851_v40  ;;  %v1536_v31 = vmax.f32 %v3905_v53, %v1492_v30  ;;  %v2604_v34 = vpop.f32.mrb[91].mxu0  ;;  %v2699_v60 = vpop.f32.mrb[91].mxu1 }
 0x1e8   : > { %v1908_v2 = vmax.f32 %v1883_v52, 0.0  ;;  %v1852_v10 = vmax.f32 %v1536_v31, %v1808_v55 }
 0x1e9   : > { %v1497_v1 = vpop.f32.mrb[92].mxu0  ;;  %v1813_v32 = vpop.f32.mrb[92].mxu1 }
 0x1ea   : > { %1934 = vst.msk [vmem:[%s3726_s5 + $0x98] sm:$0xff] %vm1914_vm5, %v1908_v2  ;;  %v1884_v8 = vadd.f32 %v3717_v22, %v1852_v10  ;;  %v1537_v33 = vmax.f32 %v3906_v9, %v1497_v1  ;;  %v2607_v42 = vpop.f32.mrb[93].mxu0  ;;  %v2702_v44 = vpop.f32.mrb[93].mxu1 }
 0x1ec   : > { %v1909_v25 = vmax.f32 %v1884_v8, 0.0  ;;  %v1853_v29 = vmax.f32 %v1537_v33, %v1813_v32 }
 0x1ed   : > { %v1502_v46 = vpop.f32.mrb[94].mxu0  ;;  %v1818_v41 = vpop.f32.mrb[94].mxu1 }
 0x1ee   : > { %1935 = vst.msk [vmem:[%s3726_s5 + $0xa0] sm:$0xff] %vm1914_vm5, %v1909_v25  ;;  %v1885_v43 = vadd.f32 %v3717_v22, %v1853_v29  ;;  %v1538_v58 = vmax.f32 %v3907_v57, %v1502_v46  ;;  %v2610_v39 = vpop.f32.mrb[95].mxu0  ;;  %v2705_v13 = vpop.f32.mrb[95].mxu1 }
 0x1f0   : > { %v1910_v51 = vmax.f32 %v1885_v43, 0.0  ;;  %v1854_v61 = vmax.f32 %v1538_v58, %v1818_v41 }
 0x1f1   : > { %v1507_v14 = vpop.f32.mrb[96].mxu0  ;;  %v1823_v56 = vpop.f32.mrb[96].mxu1 }
 0x1f2   : > { %1936 = vst.msk [vmem:[%s3726_s5 + $0xa8] sm:$0xff] %vm1914_vm5, %v1910_v51  ;;  %v1886_v59 = vadd.f32 %v3717_v22, %v1854_v61  ;;  %v1539_v15 = vmax.f32 %v3908_v50, %v1507_v14  ;;  %v2613_v38 = vpop.f32.mrb[97].mxu0  ;;  %v2708_v26 = vpop.f32.mrb[97].mxu1 }
 0x1f4   : > { %v1911_v12 = vmax.f32 %v1886_v59, 0.0  ;;  %v1855_v21 = vmax.f32 %v1539_v15, %v1823_v56 }
 0x1f5   : > { %v1512_v45 = vpop.f32.mrb[98].mxu0  ;;  %v1828_v16 = vpop.f32.mrb[98].mxu1 }
 0x1f6   : > { %1937 = vst.msk [vmem:[%s3726_s5 + $0xb0] sm:$0xff] %vm1914_vm5, %v1911_v12  ;;  %v1887_v62 = vadd.f32 %v3717_v22, %v1855_v21  ;;  %v1540_v7 = vmax.f32 %v3909_v5, %v1512_v45  ;;  %v2616_v18 = vpop.f32.mrb[99].mxu0  ;;  %v2711_v19 = vpop.f32.mrb[99].mxu1 }
 0x1f8   : > { %v1912_v63 = vmax.f32 %v1887_v62, 0.0  ;;  %v1856_v49 = vmax.f32 %v1540_v7, %v1828_v16 }
 0x1fa   : > { %1938 = vst.msk [vmem:[%s3726_s5 + $0xb8] sm:$0xff] %vm1914_vm5, %v1912_v63  ;;  %v1888_v54 = vadd.f32 %v3717_v22, %v1856_v49 }
 0x1fc   : > { %v1913_v47 = vmax.f32 %v1888_v54, 0.0 }
 0x1fe   : > { %1939 = vst.msk [vmem:[%s3726_s5 + $0xc0] sm:$0xff] %vm1914_vm5, %v1913_v47 }
 0x1ff PF: > { %p10_p9 = scmp.ge.s32.totalorder %s2871_s16, 4   ;;  %s3910_s12 = smov %s2824_s13 }
 0x200   : > { %s3911_s13 = smov %s2880_s19  ;;  %s3912_s14 = smov %s2871_s16 }
 0x201   :  { %12 = sbr.rel (!%p10_p9) target bundleno = 2 (0x2), region = 108 }

// kernel: net_forward.5
= control target key start
LH: loop header
LB: loop body
LE: loop exit
PB: predicated region body
PF: predicated region fallthrough
CT: control target
= control target key end

     0   :  { %v677_v2 = vmov 0.0|0.0   ;;  %vm87_vm0 = vcmask 130048   ;;  %vm678_vm1 = vmmov 0   ;;  %s1016_s1 = inlined_call_operand.vmem [shape: f32[400,128], index: 1, kind: input, shape index: {}]   ;;  %s1017_s0 = inlined_call_operand.vmem [shape: f32[8,400], index: 0, kind: input, shape index: {}]   ;;  %s1018_s3 = inlined_call_operand.vmem [shape: f32[128,128], index: 3, kind: input, shape index: {}]   ;;  %s1019_s5 = inlined_call_operand.vmem [shape: f32[128,128], index: 5, kind: input, shape index: {}]   ;;  %s1020_s2 = inlined_call_operand.vmem [shape: f32[1,128], index: 2, kind: input, shape index: {}]   ;;  %s1021_s4 = inlined_call_operand.vmem [shape: f32[1,128], index: 4, kind: input, shape index: {}]   ;;  %s1022_s6 = inlined_call_operand.vmem [shape: f32[1,128], index: 6, kind: input, shape index: {}]   ;;  %s1023_s7 = inlined_call_operand.vmem [shape: f32[8,128], index: 7, kind: output, shape index: {}]  }
   0x1   :  { %v46_v0 = vld [vmem:[%s1016_s1 + $0x80] sm:$0xff]  ;;  %v47_v1 = vld [vmem:[%s1016_s1 + $0x88] sm:$0xff]  ;;  %599 = vmatprep.subr.bf16.mxu1 %v677_v2  ;;  %v48_v10 = vld [vmem:[%s1016_s1 + $0x90] sm:$0xff] }
   0x2   :  { %v30_v3 = vld [vmem:[%s1016_s1] sm:$0xff]  ;;  %v567_v4 = vpack.c.bf16 %v47_v1, %v46_v0  ;;  %v31_v5 = vld [vmem:[%s1016_s1 + $0x8] sm:$0xff]  ;;  %v49_v11 = vld [vmem:[%s1016_s1 + $0x98] sm:$0xff] }
   0x3   :  { %v62_v6 = vld [vmem:[%s1016_s1 + $0x100] sm:$0xff]  ;;  %v63_v7 = vld [vmem:[%s1016_s1 + $0x108] sm:$0xff]  ;;  %v569_v8 = vpack.c.bf16 %v31_v5, %v30_v3  ;;  %v32_v12 = vld [vmem:[%s1016_s1 + $0x10] sm:$0xff]  ;;  %v571_v13 = vpack.c.bf16 %v49_v11, %v48_v10 }
   0x4   :  { %v600_v9 = vpack.c.bf16 %v63_v7, %v62_v6  ;;  %568 = vmatprep.subr.bf16.mxu0 %v567_v4  ;;  %v33_v14 = vld [vmem:[%s1016_s1 + $0x18] sm:$0xff]  ;;  %v64_v15 = vld [vmem:[%s1016_s1 + $0x110] sm:$0xff]  ;;  %v50_v19 = vld [vmem:[%s1016_s1 + $0xa0] sm:$0xff] }
   0x5   :  { %v65_v16 = vld [vmem:[%s1016_s1 + $0x118] sm:$0xff]  ;;  %570 = vmatpush3.bf16.msra.mxu0 %v569_v8  ;;  %v573_v17 = vpack.c.bf16 %v33_v14, %v32_v12  ;;  %v51_v20 = vld [vmem:[%s1016_s1 + $0xa8] sm:$0xff]  ;;  %v34_v21 = vld [vmem:[%s1016_s1 + $0x20] sm:$0xff] }
   0x6   :  { %601 = vmatpush1.bf16.msra.mxu1 %v600_v9  ;;  %v603_v18 = vpack.c.bf16 %v65_v16, %v64_v15  ;;  %572 = vmatprep.subr.bf16.mxu0 %v571_v13  ;;  %v575_v22 = vpack.c.bf16 %v51_v20, %v50_v19  ;;  %v35_v23 = vld [vmem:[%s1016_s1 + $0x28] sm:$0xff]  ;;  %v66_v24 = vld [vmem:[%s1016_s1 + $0x120] sm:$0xff]  ;;  %v52_v26 = vld [vmem:[%s1016_s1 + $0xb0] sm:$0xff] }
   0x7   :  { %602 = vmatprep.subr.bf16.mxu1 %v677_v2  ;;  %v67_v25 = vld [vmem:[%s1016_s1 + $0x128] sm:$0xff]  ;;  %v53_v27 = vld [vmem:[%s1016_s1 + $0xb8] sm:$0xff]  ;;  %v577_v28 = vpack.c.bf16 %v35_v23, %v34_v21  ;;  %v36_v30 = vld [vmem:[%s1016_s1 + $0x30] sm:$0xff] }
   0x8   :  { %v606_v29 = vpack.c.bf16 %v67_v25, %v66_v24  ;;  %v579_v31 = vpack.c.bf16 %v53_v27, %v52_v26  ;;  %v37_v32 = vld [vmem:[%s1016_s1 + $0x38] sm:$0xff]  ;;  %v68_v33 = vld [vmem:[%s1016_s1 + $0x130] sm:$0xff]  ;;  %v54_v35 = vld [vmem:[%s1016_s1 + $0xc0] sm:$0xff] }
   0x9   :  { %574 = vmatpush3.bf16.msra.mxu0 %v573_v17  ;;  %v69_v34 = vld [vmem:[%s1016_s1 + $0x138] sm:$0xff]  ;;  %v55_v36 = vld [vmem:[%s1016_s1 + $0xc8] sm:$0xff]  ;;  %v581_v37 = vpack.c.bf16 %v37_v32, %v36_v30  ;;  %v38_v39 = vld [vmem:[%s1016_s1 + $0x40] sm:$0xff] }
   0xa   :  { %604 = vmatpush1.bf16.msra.mxu1 %v603_v18  ;;  %576 = vmatprep.subr.bf16.mxu0 %v575_v22  ;;  %v609_v38 = vpack.c.bf16 %v69_v34, %v68_v33  ;;  %v583_v40 = vpack.c.bf16 %v55_v36, %v54_v35  ;;  %v39_v41 = vld [vmem:[%s1016_s1 + $0x48] sm:$0xff]  ;;  %v70_v42 = vld [vmem:[%s1016_s1 + $0x140] sm:$0xff]  ;;  %v56_v44 = vld [vmem:[%s1016_s1 + $0xd0] sm:$0xff] }
   0xb   :  { %605 = vmatprep.subr.bf16.mxu1 %v677_v2  ;;  %v71_v43 = vld [vmem:[%s1016_s1 + $0x148] sm:$0xff]  ;;  %v57_v45 = vld [vmem:[%s1016_s1 + $0xd8] sm:$0xff]  ;;  %v585_v46 = vpack.c.bf16 %v39_v41, %v38_v39  ;;  %v40_v48 = vld [vmem:[%s1016_s1 + $0x50] sm:$0xff]  ;;  %v679_v41 = vmov 0.0  }
   0xc   :  { %v612_v47 = vpack.c.bf16 %v71_v43, %v70_v42  ;;  %v41_v49 = vld [vmem:[%s1016_s1 + $0x58] sm:$0xff]  ;;  %v27_v50 = vld [vmem:[%s1017_s0 + $0x8] sm:$0xff]  ;;  %v587_v51 = vpack.c.bf16 %v57_v45, %v56_v44  ;;  %v72_v52 = vld [vmem:[%s1016_s1 + $0x150] sm:$0xff] }
   0xd   :  { %578 = vmatpush3.bf16.msra.mxu0 %v577_v28  ;;  %v73_v53 = vld [vmem:[%s1016_s1 + $0x158] sm:$0xff]  ;;  %v58_v55 = vld [vmem:[%s1016_s1 + $0xe0] sm:$0xff]  ;;  %v59_v56 = vld [vmem:[%s1016_s1 + $0xe8] sm:$0xff]  ;;  %155 = vmatprep.mubr.f32.mxu0 %v27_v50  ;;  %v589_v57 = vpack.c.bf16 %v41_v49, %v40_v48 }
   0xe   :  { %607 = vmatpush1.bf16.msra.mxu1 %v606_v29  ;;  %580 = vmatprep.subr.bf16.mxu0 %v579_v31  ;;  %v29_v54 = vld [vmem:[%s1017_s0 + $0x18] sm:$0xff]  ;;  %v615_v58 = vpack.c.bf16 %v73_v53, %v72_v52  ;;  %v42_v59 = vld [vmem:[%s1016_s1 + $0x60] sm:$0xff]  ;;  %v591_v60 = vpack.c.bf16 %v59_v56, %v58_v55  ;;  %v43_v61 = vld [vmem:[%s1016_s1 + $0x68] sm:$0xff] }
   0xf   :  { %608 = vmatprep.subr.bf16.mxu1 %v677_v2  ;;  %425 = vmatprep.mubr.msk.f32.mxu1 %vm87_vm0, %v29_v54  ;;  %v74_v62 = vld [vmem:[%s1016_s1 + $0x160] sm:$0xff]  ;;  %v75_v63 = vld [vmem:[%s1016_s1 + $0x168] sm:$0xff]  ;;  %v60_v0 = vld [vmem:[%s1016_s1 + $0xf0] sm:$0xff]  ;;  %v593_v3 = vpack.c.bf16 %v43_v61, %v42_v59 }
  0x10   :  { %v61_v1 = vld [vmem:[%s1016_s1 + $0xf8] sm:$0xff]  ;;  %v618_v4 = vpack.c.bf16 %v75_v63, %v74_v62  ;;  %v44_v5 = vld [vmem:[%s1016_s1 + $0x70] sm:$0xff]  ;;  %v78_v12 = vld [vmem:[%s1016_s1 + $0x180] sm:$0xff] }
  0x11   :  { %582 = vmatpush3.bf16.msra.mxu0 %v581_v37  ;;  %v595_v6 = vpack.c.bf16 %v61_v1, %v60_v0  ;;  %v45_v7 = vld [vmem:[%s1016_s1 + $0x78] sm:$0xff]  ;;  %v76_v8 = vld [vmem:[%s1016_s1 + $0x170] sm:$0xff]  ;;  %v79_v13 = vld [vmem:[%s1016_s1 + $0x188] sm:$0xff] }
  0x12   :  { %610 = vmatpush1.bf16.msra.mxu1 %v609_v38  ;;  %584 = vmatprep.subr.bf16.mxu0 %v583_v40  ;;  %v77_v9 = vld [vmem:[%s1016_s1 + $0x178] sm:$0xff]  ;;  %v597_v10 = vpack.c.bf16 %v45_v7, %v44_v5  ;;  %v232_v14 = vld [vmem:[%s1018_s3] sm:$0xff]  ;;  %v233_v15 = vld [vmem:[%s1018_s3 + $0x8] sm:$0xff]  ;;  %v624_v17 = vpack.c.bf16 %v79_v13, %v78_v12 }
  0x13   :  { %611 = vmatprep.subr.bf16.mxu1 %v677_v2  ;;  %v621_v11 = vpack.c.bf16 %v77_v9, %v76_v8  ;;  %v26_v16 = vld [vmem:[%s1017_s0] sm:$0xff]  ;;  %v627_v18 = vpack.c.bf16 %v233_v15, %v232_v14  ;;  %v234_v19 = vld [vmem:[%s1018_s3 + $0x10] sm:$0xff]  ;;  %v235_v20 = vld [vmem:[%s1018_s3 + $0x18] sm:$0xff] }
  0x14   :  { %v28_v21 = vld [vmem:[%s1017_s0 + $0x10] sm:$0xff]  ;;  %v630_v22 = vpack.c.bf16 %v235_v20, %v234_v19  ;;  %v236_v23 = vld [vmem:[%s1018_s3 + $0x20] sm:$0xff]  ;;  %v237_v24 = vld [vmem:[%s1018_s3 + $0x28] sm:$0xff] }
  0x15   :  { %586 = vmatpush3.bf16.msra.mxu0 %v585_v46  ;;  %v633_v25 = vpack.c.bf16 %v237_v24, %v236_v23  ;;  %v238_v26 = vld [vmem:[%s1018_s3 + $0x30] sm:$0xff]  ;;  %v239_v27 = vld [vmem:[%s1018_s3 + $0x38] sm:$0xff]  ;;  %v240_v29 = vld [vmem:[%s1018_s3 + $0x40] sm:$0xff] }
  0x16   :  { %613 = vmatpush1.bf16.msra.mxu1 %v612_v47  ;;  %588 = vmatprep.subr.bf16.mxu0 %v587_v51  ;;  %v636_v28 = vpack.c.bf16 %v239_v27, %v238_v26  ;;  %v241_v30 = vld [vmem:[%s1018_s3 + $0x48] sm:$0xff]  ;;  %v242_v32 = vld [vmem:[%s1018_s3 + $0x50] sm:$0xff]  ;;  %v243_v33 = vld [vmem:[%s1018_s3 + $0x58] sm:$0xff] }
  0x17   :  { %614 = vmatprep.subr.bf16.mxu1 %v677_v2  ;;  %v639_v31 = vpack.c.bf16 %v241_v30, %v240_v29  ;;  %v642_v34 = vpack.c.bf16 %v243_v33, %v242_v32  ;;  %v244_v35 = vld [vmem:[%s1018_s3 + $0x60] sm:$0xff]  ;;  %v245_v36 = vld [vmem:[%s1018_s3 + $0x68] sm:$0xff]  ;;  %v246_v38 = vld [vmem:[%s1018_s3 + $0x70] sm:$0xff] }
  0x18   :  { %v645_v37 = vpack.c.bf16 %v245_v36, %v244_v35  ;;  %v247_v39 = vld [vmem:[%s1018_s3 + $0x78] sm:$0xff]  ;;  %v326_v42 = vld [vmem:[%s1019_s5] sm:$0xff]  ;;  %v327_v43 = vld [vmem:[%s1019_s5 + $0x8] sm:$0xff] }
  0x19   :  { %590 = vmatpush3.bf16.msra.mxu0 %v589_v57  ;;  %v648_v40 = vpack.c.bf16 %v247_v39, %v246_v38  ;;  %v328_v44 = vld [vmem:[%s1019_s5 + $0x10] sm:$0xff]  ;;  %v651_v45 = vpack.c.bf16 %v327_v43, %v326_v42  ;;  %v329_v46 = vld [vmem:[%s1019_s5 + $0x18] sm:$0xff]  ;;  %v330_v48 = vld [vmem:[%s1019_s5 + $0x20] sm:$0xff] }
  0x1a   :  { %616 = vmatpush1.bf16.msra.mxu1 %v615_v58  ;;  %592 = vmatprep.subr.bf16.mxu0 %v591_v60  ;;  %v654_v47 = vpack.c.bf16 %v329_v46, %v328_v44  ;;  %v331_v49 = vld [vmem:[%s1019_s5 + $0x28] sm:$0xff]  ;;  %v332_v51 = vld [vmem:[%s1019_s5 + $0x30] sm:$0xff]  ;;  %v333_v52 = vld [vmem:[%s1019_s5 + $0x38] sm:$0xff] }
  0x1b   :  { %617 = vmatprep.subr.bf16.mxu1 %v677_v2  ;;  %v657_v50 = vpack.c.bf16 %v331_v49, %v330_v48  ;;  %v660_v53 = vpack.c.bf16 %v333_v52, %v332_v51  ;;  %v334_v54 = vld [vmem:[%s1019_s5 + $0x40] sm:$0xff]  ;;  %v335_v55 = vld [vmem:[%s1019_s5 + $0x48] sm:$0xff]  ;;  %v336_v57 = vld [vmem:[%s1019_s5 + $0x50] sm:$0xff] }
  0x1c   :  { %v663_v56 = vpack.c.bf16 %v335_v55, %v334_v54  ;;  %v337_v58 = vld [vmem:[%s1019_s5 + $0x58] sm:$0xff]  ;;  %v338_v60 = vld [vmem:[%s1019_s5 + $0x60] sm:$0xff]  ;;  %v339_v61 = vld [vmem:[%s1019_s5 + $0x68] sm:$0xff] }
  0x1d   :  { %594 = vmatpush3.bf16.msra.mxu0 %v593_v3  ;;  %v666_v59 = vpack.c.bf16 %v337_v58, %v336_v57  ;;  %v669_v62 = vpack.c.bf16 %v339_v61, %v338_v60  ;;  %v424_v1 = vld [vmem:[%s1020_s2] ss:$0 sm:$0xff]  ;;  %v340_v9 = vld [vmem:[%s1019_s5 + $0x70] sm:$0xff] }
  0x1e   :  { %619 = vmatpush1.bf16.msra.mxu1 %v618_v4  ;;  %596 = vmatprep.subr.bf16.mxu0 %v595_v6 }
  0x1f   :  { %620 = vmatprep.subr.bf16.mxu1 %v677_v2 }
  0x21   :  { %598 = vmatpush3.bf16.msra.mxu0 %v597_v10 }
  0x22   :  { %622 = vmatpush1.bf16.msra.mxu1 %v621_v11  ;;  %626 = vmatprep.subr.bf16.mxu0 %v677_v2  ;;  %v426_v11 = vld [vmem:[%s1021_s4] ss:$0 sm:$0xff] }
  0x23   :  { %623 = vmatprep.subr.bf16.mxu1 %v677_v2 }
  0x24   :  { %156 = vmatmul.mubr.f32.vlgmr.msra.gmra.mrb[0].mxu0 %v26_v16  ;;  %v427_v16 = vld [vmem:[%s1022_s6] ss:$0 sm:$0xff] }
  0x25   :  { %628 = vmatpush3.bf16.msra.mxu0 %v627_v18  ;;  %529 = vmatprep.mubr.msk.f32.mxu0 %vm678_vm1, %v679_v41 }
  0x26   :  { %625 = vmatpush1.bf16.msra.mxu1 %v624_v17  ;;  %629 = vmatprep.subr.bf16.mxu0 %v677_v2 }
  0x27   :  { %650 = vmatprep.subr.bf16.mxu1 %v677_v2 }
  0x29   :  { %226 = vmatmul.mubr.f32.vlgmr.msra.gmra.mrb[0].mxu1 %v28_v21  ;;  %631 = vmatpush3.bf16.msra.mxu0 %v630_v22 }
  0x2a   :  { %632 = vmatprep.subr.bf16.mxu0 %v677_v2  ;;  %564 = vmatprep.mubr.msk.f32.mxu1 %vm678_vm1, %v679_v41 }
  0x2b   :  { %652 = vmatpush3.bf16.msra.mxu1 %v651_v45 }
  0x2c   :  { %653 = vmatprep.subr.bf16.mxu1 %v677_v2 }
  0x2d   :  { %634 = vmatpush3.bf16.msra.mxu0 %v633_v25 }
  0x2e   :  { %635 = vmatprep.subr.bf16.mxu0 %v677_v2 }
  0x2f   :  { %655 = vmatpush3.bf16.msra.mxu1 %v654_v47 }
  0x30   :  { %656 = vmatprep.subr.bf16.mxu1 %v677_v2 }
  0x31   :  { %637 = vmatpush3.bf16.msra.mxu0 %v636_v28 }
  0x32   :  { %638 = vmatprep.subr.bf16.mxu0 %v677_v2 }
  0x33   :  { %658 = vmatpush3.bf16.msra.mxu1 %v657_v50 }
  0x34   :  { %659 = vmatprep.subr.bf16.mxu1 %v677_v2 }
  0x35   :  { %640 = vmatpush3.bf16.msra.mxu0 %v639_v31 }
  0x36   :  { %641 = vmatprep.subr.bf16.mxu0 %v677_v2 }
  0x37   :  { %661 = vmatpush3.bf16.msra.mxu1 %v660_v53 }
  0x38   :  { %662 = vmatprep.subr.bf16.mxu1 %v677_v2 }
  0x39   :  { %643 = vmatpush3.bf16.msra.mxu0 %v642_v34 }
  0x3a   :  { %644 = vmatprep.subr.bf16.mxu0 %v677_v2 }
  0x3b   :  { %664 = vmatpush3.bf16.msra.mxu1 %v663_v56 }
  0x3c   :  { %665 = vmatprep.subr.bf16.mxu1 %v677_v2 }
  0x3d   :  { %646 = vmatpush3.bf16.msra.mxu0 %v645_v37 }
  0x3e   :  { %647 = vmatprep.subr.bf16.mxu0 %v677_v2 }
  0x3f   :  { %667 = vmatpush3.bf16.msra.mxu1 %v666_v59 }
  0x40   :  { %668 = vmatprep.subr.bf16.mxu1 %v677_v2 }
  0x41   :  { %649 = vmatpush3.bf16.msra.mxu0 %v648_v40 }
  0x43   :  { %670 = vmatpush3.bf16.msra.mxu1 %v669_v62 }
  0x44   :  { %671 = vmatprep.subr.bf16.mxu1 %v677_v2  ;;  %v341_v2 = vld [vmem:[%s1019_s5 + $0x78] sm:$0xff] }
  0x45   :  { %v672_v10 = vpack.c.bf16 %v341_v2, %v340_v9 }
  0x47   :  { %673 = vmatpush3.bf16.msra.mxu1 %v672_v10 }
  0xf7   :  { %v460_v63 = vpop.f32.mrb[0].mxu0 }
  0xf8   :  { %v461_v0 = vpop.f32.mrb[1].mxu0 }
  0xf9   :  { %v462_v3 = vadd.f32 %v461_v0, %v460_v63 }
  0xfb   :  { %v158_v4 = vadd.f32 %v462_v3, %v424_v1 }
  0xfc   :  { %v227_v5 = vpop.f32.mrb[0].mxu1 }
  0xfd   :  { %v229_v6 = vpop.f32.mrb[1].mxu1  ;;  %v228_v7 = vadd.f32 %v227_v5, %v158_v4 }
  0xff   :  { %v231_v8 = vmax.f32 %v228_v7, 0.0 }
 0x101   :  { %530 = vmatmul.mubr.f32.vlgmr.msra.gmra.mrb[2].mxu0 %v231_v8 }
 0x1d4   :  { %v321_v12 = vpop.f32.mrb[2].mxu0 }
 0x1d5   :  { %v322_v13 = vadd.f32 %v426_v11, %v321_v12  ;;  %v531_v14 = vpop.f32.mrb[3].mxu0 }
 0x1d7   :  { %v325_v15 = vmax.f32 %v322_v13, 0.0 }
 0x1d9   :  { %565 = vmatmul.mubr.f32.vlgmr.msra.gmra.mrb[2].mxu1 %v325_v15 }
 0x2ac   :  { %v415_v17 = vpop.f32.mrb[2].mxu1 }
 0x2ad   :  { %v416_v18 = vadd.f32 %v427_v16, %v415_v17  ;;  %v566_v19 = vpop.f32.mrb[3].mxu1 }
 0x2af   :  { %419 = vst [vmem:[%s1023_s7] sm:$0xff] %v416_v18 }

// kernel: net_forward.4
= control target key start
LH: loop header
LB: loop body
LE: loop exit
PB: predicated region body
PF: predicated region fallthrough
CT: control target
= control target key end

     0   :  { %v820_v0 = vmov 0.0|0.0   ;;  %vm47_vm0 = vcmask 179200   ;;  %v821_v30 = vmov 0.0   ;;  %vm69_vm1 = vcmask 1045504   ;;  %s1233_s1 = inlined_call_operand.vmem [shape: f32[150,128], index: 1, kind: input, shape index: {}]   ;;  %s1234_s0 = inlined_call_operand.vmem [shape: f32[4,56,150], index: 0, kind: input, shape index: {}]   ;;  %s1235_s2 = inlined_call_operand.vmem [shape: f32[1,128], index: 2, kind: input, shape index: {}]   ;;  %s1236_s3 = inlined_call_operand.vmem [shape: f32[56,16], index: 3, kind: output, shape index: {}]  }
   0x1   :  { %710 = vmatprep.subr.bf16.mxu0 %v820_v0  ;;  %v14_v1 = vld [vmem:[%s1233_s1] sm:$0xff]  ;;  %v15_v2 = vld [vmem:[%s1233_s1 + $0x8] sm:$0xff]  ;;  %737 = vmatprep.subr.bf16.mxu1 %v820_v0  ;;  %v16_v3 = vld [vmem:[%s1233_s1 + $0x10] sm:$0xff]  ;;  %vm623_vm2 = vcmask 130048  }
   0x2   :  { %v853_v4 = vpack.c.bf16 %v15_v2, %v14_v1  ;;  %v17_v5 = vld [vmem:[%s1233_s1 + $0x18] sm:$0xff]  ;;  %v18_v7 = vld [vmem:[%s1233_s1 + $0x20] sm:$0xff]  ;;  %v19_v8 = vld [vmem:[%s1233_s1 + $0x28] sm:$0xff] }
   0x3   :  { %v860_v6 = vpack.c.bf16 %v17_v5, %v16_v3  ;;  %v34_v9 = vld [vmem:[%s1234_s0 + $0x8] sm:$0xff]  ;;  %v875_v10 = vpack.c.bf16 %v19_v8, %v18_v7  ;;  %v644_v11 = vld [vmem:[%s1234_s0 + $0x78] sm:$0xff]  ;;  %v20_v12 = vld [vmem:[%s1233_s1 + $0x30] sm:$0xff] }
   0x4   :  { %712 = vmatpush1.bf16.msra.mxu0 %v853_v4  ;;  %739 = vmatpush1.bf16.msra.mxu1 %v853_v4  ;;  %v21_v13 = vld [vmem:[%s1233_s1 + $0x38] sm:$0xff]  ;;  %v22_v15 = vld [vmem:[%s1233_s1 + $0x40] sm:$0xff]  ;;  %v23_v16 = vld [vmem:[%s1233_s1 + $0x48] sm:$0xff] }
   0x5   :  { %713 = vmatprep.subr.bf16.mxu0 %v820_v0  ;;  %740 = vmatprep.subr.bf16.mxu1 %v820_v0  ;;  %v892_v14 = vpack.c.bf16 %v21_v13, %v20_v12  ;;  %v904_v17 = vpack.c.bf16 %v23_v16, %v22_v15  ;;  %v24_v18 = vld [vmem:[%s1233_s1 + $0x50] sm:$0xff]  ;;  %v25_v19 = vld [vmem:[%s1233_s1 + $0x58] sm:$0xff]  ;;  %v26_v21 = vld [vmem:[%s1233_s1 + $0x60] sm:$0xff] }
   0x6   :  { %636 = vmatprep.mubr.msk.f32.mxu0 %vm47_vm0, %v34_v9  ;;  %658 = vmatprep.mubr.msk.f32.mxu1 %vm47_vm0, %v644_v11  ;;  %v916_v20 = vpack.c.bf16 %v25_v19, %v24_v18  ;;  %v27_v22 = vld [vmem:[%s1233_s1 + $0x68] sm:$0xff]  ;;  %v28_v24 = vld [vmem:[%s1233_s1 + $0x70] sm:$0xff]  ;;  %v29_v25 = vld [vmem:[%s1233_s1 + $0x78] sm:$0xff] }
   0x7   :  { %v928_v23 = vpack.c.bf16 %v27_v22, %v26_v21  ;;  %v940_v26 = vpack.c.bf16 %v29_v25, %v28_v24  ;;  %v30_v27 = vld [vmem:[%s1233_s1 + $0x80] sm:$0xff]  ;;  %v31_v28 = vld [vmem:[%s1233_s1 + $0x88] sm:$0xff]  ;;  %v962_v31 = vld [vmem:[%s1233_s1 + $0x90] sm:$0x3f] }
   0x8   :  { %715 = vmatpush1.bf16.msra.mxu0 %v860_v6  ;;  %742 = vmatpush1.bf16.msra.mxu1 %v860_v6  ;;  %v952_v29 = vpack.c.bf16 %v31_v28, %v30_v27  ;;  %v33_v32 = vld [vmem:[%s1234_s0] sm:$0xff]  ;;  %v643_v33 = vld [vmem:[%s1234_s0 + $0x70] sm:$0xff]  ;;  %v36_v34 = vld [vmem:[%s1234_s0 + $0x18] sm:$0xff] }
   0x9   :  { %716 = vmatprep.subr.bf16.mxu0 %v820_v0  ;;  %743 = vmatprep.subr.bf16.mxu1 %v820_v0  ;;  %v35_v35 = vld [vmem:[%s1234_s0 + $0x10] sm:$0xff]  ;;  %v646_v36 = vld [vmem:[%s1234_s0 + $0x88] sm:$0xff]  ;;  %v645_v37 = vld [vmem:[%s1234_s0 + $0x80] sm:$0xff] }
   0xa   :  { %v38_v38 = vld [vmem:[%s1234_s0 + $0x28] sm:$0xff]  ;;  %v37_v39 = vld [vmem:[%s1234_s0 + $0x20] sm:$0xff]  ;;  %v648_v40 = vld [vmem:[%s1234_s0 + $0x98] sm:$0xff] }
   0xb   :  { %v647_v41 = vld [vmem:[%s1234_s0 + $0x90] sm:$0xff]  ;;  %v40_v42 = vld [vmem:[%s1234_s0 + $0x38] sm:$0xff]  ;;  %v650_v44 = vld [vmem:[%s1234_s0 + $0xa8] sm:$0xff] }
   0xc   :  { %718 = vmatpush1.bf16.msra.mxu0 %v875_v10  ;;  %745 = vmatpush1.bf16.msra.mxu1 %v875_v10  ;;  %v39_v43 = vld [vmem:[%s1234_s0 + $0x30] sm:$0xff]  ;;  %v649_v45 = vld [vmem:[%s1234_s0 + $0xa0] sm:$0xff]  ;;  %v42_v46 = vld [vmem:[%s1234_s0 + $0x48] sm:$0xff] }
   0xd   :  { %719 = vmatprep.subr.bf16.mxu0 %v820_v0  ;;  %746 = vmatprep.subr.bf16.mxu1 %v820_v0  ;;  %v41_v47 = vld [vmem:[%s1234_s0 + $0x40] sm:$0xff]  ;;  %v652_v48 = vld [vmem:[%s1234_s0 + $0xb8] sm:$0xff]  ;;  %v651_v49 = vld [vmem:[%s1234_s0 + $0xb0] sm:$0xff] }
   0xe   :  { %v44_v50 = vld [vmem:[%s1234_s0 + $0x58] sm:$0xff]  ;;  %v43_v51 = vld [vmem:[%s1234_s0 + $0x50] sm:$0xff]  ;;  %v654_v52 = vld [vmem:[%s1234_s0 + $0xc8] sm:$0xff] }
   0xf   :  { %v653_v53 = vld [vmem:[%s1234_s0 + $0xc0] sm:$0xff]  ;;  %v46_v54 = vld [vmem:[%s1234_s0 + $0x68] sm:$0xff]  ;;  %v656_v56 = vld [vmem:[%s1234_s0 + $0xd8] sm:$0xff] }
  0x10   :  { %721 = vmatpush1.bf16.msra.mxu0 %v892_v14  ;;  %748 = vmatpush1.bf16.msra.mxu1 %v892_v14  ;;  %v45_v55 = vld [vmem:[%s1234_s0 + $0x60] sm:$0xff]  ;;  %v655_v57 = vld [vmem:[%s1234_s0 + $0xd0] sm:$0xff]  ;;  %v666_v58 = vld [vmem:[%s1234_s0 + $0xe8] sm:$0xff] }
  0x11   :  { %722 = vmatprep.subr.bf16.mxu0 %v820_v0  ;;  %749 = vmatprep.subr.bf16.mxu1 %v820_v0  ;;  %v688_v59 = vld [vmem:[%s1234_s0 + $0x158] sm:$0xff]  ;;  %v665_v60 = vld [vmem:[%s1234_s0 + $0xe0] sm:$0xff]  ;;  %v687_v62 = vld [vmem:[%s1234_s0 + $0x150] sm:$0xff] }
  0x12   :  { %v668_v61 = vld [vmem:[%s1234_s0 + $0xf8] sm:$0xff]  ;;  %v690_v63 = vld [vmem:[%s1234_s0 + $0x168] sm:$0xff]  ;;  %v689_v2 = vld [vmem:[%s1234_s0 + $0x160] sm:$0xff] }
  0x13   :  { %v670_v1 = vld [vmem:[%s1234_s0 + $0x108] sm:$0xff]  ;;  %v692_v3 = vld [vmem:[%s1234_s0 + $0x178] sm:$0xff]  ;;  %v671_v8 = vld [vmem:[%s1234_s0 + $0x110] sm:$0xff] }
  0x14   :  { %724 = vmatpush1.bf16.msra.mxu0 %v904_v17  ;;  %751 = vmatpush1.bf16.msra.mxu1 %v904_v17  ;;  %v672_v5 = vld [vmem:[%s1234_s0 + $0x118] sm:$0xff]  ;;  %v694_v7 = vld [vmem:[%s1234_s0 + $0x188] sm:$0xff]  ;;  %v673_v12 = vld [vmem:[%s1234_s0 + $0x120] sm:$0xff] }
  0x15   :  { %725 = vmatprep.subr.bf16.mxu0 %v820_v0  ;;  %752 = vmatprep.subr.bf16.mxu1 %v820_v0  ;;  %v674_v9 = vld [vmem:[%s1234_s0 + $0x128] sm:$0xff]  ;;  %v696_v11 = vld [vmem:[%s1234_s0 + $0x198] sm:$0xff]  ;;  %v675_v16 = vld [vmem:[%s1234_s0 + $0x130] sm:$0xff] }
  0x16   :  { %v676_v13 = vld [vmem:[%s1234_s0 + $0x138] sm:$0xff]  ;;  %v698_v15 = vld [vmem:[%s1234_s0 + $0x1a8] sm:$0xff]  ;;  %v697_v18 = vld [vmem:[%s1234_s0 + $0x1a0] sm:$0xff] }
  0x17   :  { %v700_v19 = vld [vmem:[%s1234_s0 + $0x1b8] sm:$0xff]  ;;  %v699_v21 = vld [vmem:[%s1234_s0 + $0x1b0] sm:$0xff] }
  0x18   :  { %727 = vmatpush1.bf16.msra.mxu0 %v916_v20  ;;  %754 = vmatpush1.bf16.msra.mxu1 %v916_v20 }
  0x19   :  { %728 = vmatprep.subr.bf16.mxu0 %v820_v0  ;;  %755 = vmatprep.subr.bf16.mxu1 %v820_v0 }
  0x1c   :  { %730 = vmatpush1.bf16.msra.mxu0 %v928_v23  ;;  %757 = vmatpush1.bf16.msra.mxu1 %v928_v23 }
  0x1d   :  { %731 = vmatprep.subr.bf16.mxu0 %v820_v0  ;;  %758 = vmatprep.subr.bf16.mxu1 %v820_v0 }
  0x20   :  { %733 = vmatpush1.bf16.msra.mxu0 %v940_v26  ;;  %760 = vmatpush1.bf16.msra.mxu1 %v940_v26 }
  0x21   :  { %734 = vmatprep.subr.bf16.mxu0 %v820_v0  ;;  %761 = vmatprep.subr.bf16.mxu1 %v820_v0 }
  0x24   :  { %736 = vmatpush1.bf16.msra.mxu0 %v952_v29  ;;  %763 = vmatpush1.bf16.msra.mxu1 %v952_v29 }
  0x25   :  { %109 = vmatprep.subr.mxu0 %v821_v30  ;;  %245 = vmatprep.subr.mxu1 %v821_v30 }
  0x28   :  { %635 = vmatpush1.msk.msra.mxu0 %vm69_vm1, %v962_v31  ;;  %657 = vmatpush1.msk.msra.mxu1 %vm69_vm1, %v962_v31 }
  0x29   :  { %138 = vmatmul.mubr.f32.vlgmr.msra.gmra.mrb[0].mxu0 %v33_v32  ;;  %764 = vmatprep.subr.bf16.mxu0 %v820_v0 }
  0x2a   :  { %274 = vmatmul.mubr.f32.vlgmr.msra.gmra.mrb[0].mxu1 %v643_v33  ;;  %766 = vmatpush1.bf16.msra.mxu0 %v853_v4 }
  0x2b   :  { %791 = vmatprep.subr.bf16.mxu1 %v820_v0  ;;  %767 = vmatprep.subr.bf16.mxu0 %v820_v0 }
  0x2c   :  { %793 = vmatpush1.bf16.msra.mxu1 %v853_v4  ;;  %637 = vmatprep.mubr.msk.f32.mxu0 %vm47_vm0, %v36_v34  ;;  %v669_v4 = vld [vmem:[%s1234_s0 + $0x100] sm:$0xff] }
  0x2d   :  { %794 = vmatprep.subr.bf16.mxu1 %v820_v0  ;;  %143 = vmatmul.mubr.f32.gmra.mrb[2].mxu0 %v35_v35 }
  0x2e   :  { %769 = vmatpush1.bf16.msra.mxu0 %v860_v6  ;;  %659 = vmatprep.mubr.msk.f32.mxu1 %vm47_vm0, %v646_v36 }
  0x2f   :  { %770 = vmatprep.subr.bf16.mxu0 %v820_v0  ;;  %279 = vmatmul.mubr.f32.gmra.mrb[2].mxu1 %v645_v37 }
  0x30   :  { %796 = vmatpush1.bf16.msra.mxu1 %v860_v6  ;;  %638 = vmatprep.mubr.msk.f32.mxu0 %vm47_vm0, %v38_v38  ;;  %v691_v6 = vld [vmem:[%s1234_s0 + $0x170] sm:$0xff] }
  0x31   :  { %797 = vmatprep.subr.bf16.mxu1 %v820_v0  ;;  %148 = vmatmul.mubr.f32.gmra.mrb[4].mxu0 %v37_v39 }
  0x32   :  { %772 = vmatpush1.bf16.msra.mxu0 %v875_v10  ;;  %660 = vmatprep.mubr.msk.f32.mxu1 %vm47_vm0, %v648_v40 }
  0x33   :  { %773 = vmatprep.subr.bf16.mxu0 %v820_v0  ;;  %284 = vmatmul.mubr.f32.gmra.mrb[4].mxu1 %v647_v41 }
  0x34   :  { %799 = vmatpush1.bf16.msra.mxu1 %v875_v10  ;;  %639 = vmatprep.mubr.msk.f32.mxu0 %vm47_vm0, %v40_v42  ;;  %v693_v10 = vld [vmem:[%s1234_s0 + $0x180] sm:$0xff] }
  0x35   :  { %800 = vmatprep.subr.bf16.mxu1 %v820_v0  ;;  %153 = vmatmul.mubr.f32.gmra.mrb[6].mxu0 %v39_v43 }
  0x36   :  { %775 = vmatpush1.bf16.msra.mxu0 %v892_v14  ;;  %661 = vmatprep.mubr.msk.f32.mxu1 %vm47_vm0, %v650_v44 }
  0x37   :  { %776 = vmatprep.subr.bf16.mxu0 %v820_v0  ;;  %289 = vmatmul.mubr.f32.gmra.mrb[6].mxu1 %v649_v45 }
  0x38   :  { %802 = vmatpush1.bf16.msra.mxu1 %v892_v14  ;;  %640 = vmatprep.mubr.msk.f32.mxu0 %vm47_vm0, %v42_v46  ;;  %v695_v14 = vld [vmem:[%s1234_s0 + $0x190] sm:$0xff] }
  0x39   :  { %803 = vmatprep.subr.bf16.mxu1 %v820_v0  ;;  %158 = vmatmul.mubr.f32.gmra.mrb[8].mxu0 %v41_v47 }
  0x3a   :  { %778 = vmatpush1.bf16.msra.mxu0 %v904_v17  ;;  %662 = vmatprep.mubr.msk.f32.mxu1 %vm47_vm0, %v652_v48 }
  0x3b   :  { %779 = vmatprep.subr.bf16.mxu0 %v820_v0  ;;  %294 = vmatmul.mubr.f32.gmra.mrb[8].mxu1 %v651_v49 }
  0x3c   :  { %805 = vmatpush1.bf16.msra.mxu1 %v904_v17  ;;  %641 = vmatprep.mubr.msk.f32.mxu0 %vm47_vm0, %v44_v50  ;;  %v678_v17 = vld [vmem:[%s1234_s0 + $0x148] sm:$0xff] }
  0x3d   :  { %806 = vmatprep.subr.bf16.mxu1 %v820_v0  ;;  %163 = vmatmul.mubr.f32.gmra.mrb[10].mxu0 %v43_v51 }
  0x3e   :  { %781 = vmatpush1.bf16.msra.mxu0 %v916_v20  ;;  %663 = vmatprep.mubr.msk.f32.mxu1 %vm47_vm0, %v654_v52 }
  0x3f   :  { %782 = vmatprep.subr.bf16.mxu0 %v820_v0  ;;  %299 = vmatmul.mubr.f32.gmra.mrb[10].mxu1 %v653_v53 }
  0x40   :  { %808 = vmatpush1.bf16.msra.mxu1 %v916_v20  ;;  %642 = vmatprep.mubr.msk.f32.mxu0 %vm47_vm0, %v46_v54  ;;  %v677_v20 = vld [vmem:[%s1234_s0 + $0x140] sm:$0xff] }
  0x41   :  { %809 = vmatprep.subr.bf16.mxu1 %v820_v0  ;;  %168 = vmatmul.mubr.f32.gmra.mrb[12].mxu0 %v45_v55 }
  0x42   :  { %784 = vmatpush1.bf16.msra.mxu0 %v928_v23  ;;  %664 = vmatprep.mubr.msk.f32.mxu1 %vm47_vm0, %v656_v56 }
  0x43   :  { %785 = vmatprep.subr.bf16.mxu0 %v820_v0  ;;  %304 = vmatmul.mubr.f32.gmra.mrb[12].mxu1 %v655_v57 }
  0x44   :  { %811 = vmatpush1.bf16.msra.mxu1 %v928_v23  ;;  %680 = vmatprep.mubr.msk.f32.mxu0 %vm47_vm0, %v666_v58 }
  0x45   :  { %812 = vmatprep.subr.bf16.mxu1 %v820_v0  ;;  %702 = vmatprep.mubr.msk.f32.mxu1 %vm47_vm0, %v688_v59 }
  0x46   :  { %787 = vmatpush1.bf16.msra.mxu0 %v940_v26 }
  0x47   :  { %788 = vmatprep.subr.bf16.mxu0 %v820_v0 }
  0x48   :  { %814 = vmatpush1.bf16.msra.mxu1 %v940_v26 }
  0x49   :  { %815 = vmatprep.subr.bf16.mxu1 %v820_v0  ;;  %v667_v0 = vld [vmem:[%s1234_s0 + $0xf0] sm:$0xff] }
  0x4a   :  { %790 = vmatpush1.bf16.msra.mxu0 %v952_v29 }
  0x4b   :  { %388 = vmatprep.subr.mxu0 %v821_v30 }
  0x4c   :  { %817 = vmatpush1.bf16.msra.mxu1 %v952_v29 }
  0x4d   :  { %531 = vmatprep.subr.mxu1 %v821_v30 }
  0x4e   :  { %679 = vmatpush1.msk.msra.mxu0 %vm69_vm1, %v962_v31 }
  0x4f   :  { %417 = vmatmul.mubr.f32.vlgmr.msra.gmra.mrb[14].mxu0 %v665_v60 }
  0x50   :  { %701 = vmatpush1.msk.msra.mxu1 %vm69_vm1, %v962_v31  ;;  %681 = vmatprep.mubr.msk.f32.mxu0 %vm47_vm0, %v668_v61  ;;  %v709_v61 = vld [vmem:[%s1235_s2] ss:$0 sm:$0xff] }
  0x51   :  { %560 = vmatmul.mubr.f32.vlgmr.msra.gmra.mrb[14].mxu1 %v687_v62 }
  0x52   :  { %703 = vmatprep.mubr.msk.f32.mxu1 %vm47_vm0, %v690_v63 }
  0x53   :  { %422 = vmatmul.mubr.f32.gmra.mrb[16].mxu0 %v667_v0 }
  0x54   :  { %682 = vmatprep.mubr.msk.f32.mxu0 %vm47_vm0, %v670_v1 }
  0x55   :  { %565 = vmatmul.mubr.f32.gmra.mrb[16].mxu1 %v689_v2 }
  0x56   :  { %704 = vmatprep.mubr.msk.f32.mxu1 %vm47_vm0, %v692_v3 }
  0x57   :  { %427 = vmatmul.mubr.f32.gmra.mrb[18].mxu0 %v669_v4 }
  0x58   :  { %683 = vmatprep.mubr.msk.f32.mxu0 %vm47_vm0, %v672_v5 }
  0x59   :  { %570 = vmatmul.mubr.f32.gmra.mrb[18].mxu1 %v691_v6 }
  0x5a   :  { %705 = vmatprep.mubr.msk.f32.mxu1 %vm47_vm0, %v694_v7 }
  0x5b   :  { %432 = vmatmul.mubr.f32.gmra.mrb[20].mxu0 %v671_v8 }
  0x5c   :  { %684 = vmatprep.mubr.msk.f32.mxu0 %vm47_vm0, %v674_v9 }
  0x5d   :  { %575 = vmatmul.mubr.f32.gmra.mrb[20].mxu1 %v693_v10 }
  0x5e   :  { %706 = vmatprep.mubr.msk.f32.mxu1 %vm47_vm0, %v696_v11 }
  0x5f   :  { %437 = vmatmul.mubr.f32.gmra.mrb[22].mxu0 %v673_v12 }
  0x60   :  { %685 = vmatprep.mubr.msk.f32.mxu0 %vm47_vm0, %v676_v13 }
  0x61   :  { %580 = vmatmul.mubr.f32.gmra.mrb[22].mxu1 %v695_v14 }
  0x62   :  { %707 = vmatprep.mubr.msk.f32.mxu1 %vm47_vm0, %v698_v15 }
  0x63   :  { %442 = vmatmul.mubr.f32.gmra.mrb[24].mxu0 %v675_v16 }
  0x64   :  { %686 = vmatprep.mubr.msk.f32.mxu0 %vm47_vm0, %v678_v17 }
  0x65   :  { %585 = vmatmul.mubr.f32.gmra.mrb[24].mxu1 %v697_v18 }
  0x66   :  { %708 = vmatprep.mubr.msk.f32.mxu1 %vm47_vm0, %v700_v19 }
  0x67   :  { %447 = vmatmul.mubr.f32.gmra.mrb[26].mxu0 %v677_v20 }
  0x69   :  { %590 = vmatmul.mubr.f32.gmra.mrb[26].mxu1 %v699_v21 }
  0xfc   :  { %v139_v22 = vpop.f32.mrb[0].mxu0 }
  0xfd   :  { %v141_v23 = vpop.f32.mrb[1].mxu0  ;;  %v275_v24 = vpop.f32.mrb[0].mxu1 }
  0xfe   :  { %v309_v25 = vmax.f32 %v139_v22, %v275_v24  ;;  %v277_v26 = vpop.f32.mrb[1].mxu1 }
 0x100   :  { %v144_v27 = vpop.f32.mrb[2].mxu0 }
 0x101   :  { %v146_v28 = vpop.f32.mrb[3].mxu0 }
 0x102   :  { %v280_v29 = vpop.f32.mrb[2].mxu1 }
 0x103   :  { %v310_v30 = vmax.f32 %v144_v27, %v280_v29  ;;  %v282_v31 = vpop.f32.mrb[3].mxu1 }
 0x104   :  { %v149_v32 = vpop.f32.mrb[4].mxu0 }
 0x105   :  { %v151_v33 = vpop.f32.mrb[5].mxu0 }
 0x106   :  { %v285_v34 = vpop.f32.mrb[4].mxu1 }
 0x107   :  { %v311_v35 = vmax.f32 %v149_v32, %v285_v34  ;;  %v287_v36 = vpop.f32.mrb[5].mxu1 }
 0x108   :  { %v154_v37 = vpop.f32.mrb[6].mxu0 }
 0x109   :  { %v156_v38 = vpop.f32.mrb[7].mxu0 }
 0x10a   :  { %v290_v39 = vpop.f32.mrb[6].mxu1 }
 0x10b   :  { %v312_v40 = vmax.f32 %v154_v37, %v290_v39  ;;  %v292_v41 = vpop.f32.mrb[7].mxu1 }
 0x10c   :  { %v159_v42 = vpop.f32.mrb[8].mxu0 }
 0x10d   :  { %v161_v43 = vpop.f32.mrb[9].mxu0 }
 0x10e   :  { %v295_v44 = vpop.f32.mrb[8].mxu1 }
 0x10f   :  { %v313_v45 = vmax.f32 %v159_v42, %v295_v44  ;;  %v297_v46 = vpop.f32.mrb[9].mxu1 }
 0x110   :  { %v164_v47 = vpop.f32.mrb[10].mxu0 }
 0x111   :  { %v166_v48 = vpop.f32.mrb[11].mxu0 }
 0x112   :  { %v300_v49 = vpop.f32.mrb[10].mxu1 }
 0x113   :  { %v314_v50 = vmax.f32 %v164_v47, %v300_v49  ;;  %v302_v51 = vpop.f32.mrb[11].mxu1 }
 0x114   :  { %v1199_v52 = vpop.f32.mrb[12].mxu0 }
 0x115   :  { %v171_v53 = vpop.f32.mrb[13].mxu0 }
 0x116   :  { %v305_v54 = vpop.f32.mrb[12].mxu1 }
 0x117   :  { %v315_v55 = vmax.f32 %v1199_v52, %v305_v54  ;;  %v307_v56 = vpop.f32.mrb[13].mxu1 }
 0x122   :  { %v418_v57 = vpop.f32.mrb[14].mxu0 }
 0x123   :  { %v452_v58 = vmax.f32 %v309_v25, %v418_v57  ;;  %v420_v59 = vpop.f32.mrb[15].mxu0 }
 0x124   :  { %v561_v60 = vpop.f32.mrb[14].mxu1 }
 0x125   :  { %v595_v62 = vmax.f32 %v452_v58, %v561_v60  ;;  %v563_v63 = vpop.f32.mrb[15].mxu1 }
 0x126   :  { %v423_v0 = vpop.f32.mrb[16].mxu0 }
 0x127   :  { %v609_v1 = vadd.f32 %v709_v61, %v595_v62  ;;  %v453_v2 = vmax.f32 %v310_v30, %v423_v0  ;;  %v425_v3 = vpop.f32.mrb[17].mxu0 }
 0x128   :  { %v566_v4 = vpop.f32.mrb[16].mxu1 }
 0x129   :  { %v616_v5 = vmax.f32 %v609_v1, 0.0  ;;  %v596_v6 = vmax.f32 %v453_v2, %v566_v4  ;;  %v568_v7 = vpop.f32.mrb[17].mxu1 }
 0x12a   :  { %v428_v8 = vpop.f32.mrb[18].mxu0 }
 0x12b   :  { %624 = vst.msk [vmem:[%s1236_s3] sm:$0xff] %vm623_vm2, %v616_v5  ;;  %v610_v9 = vadd.f32 %v709_v61, %v596_v6  ;;  %v454_v10 = vmax.f32 %v311_v35, %v428_v8  ;;  %v430_v11 = vpop.f32.mrb[19].mxu0 }
 0x12c   :  { %v571_v12 = vpop.f32.mrb[18].mxu1 }
 0x12d   :  { %v617_v13 = vmax.f32 %v610_v9, 0.0  ;;  %v597_v14 = vmax.f32 %v454_v10, %v571_v12  ;;  %v573_v15 = vpop.f32.mrb[19].mxu1 }
 0x12e   :  { %v433_v16 = vpop.f32.mrb[20].mxu0 }
 0x12f   :  { %625 = vst.msk [vmem:[%s1236_s3 + $0x8] sm:$0xff] %vm623_vm2, %v617_v13  ;;  %v611_v17 = vadd.f32 %v709_v61, %v597_v14  ;;  %v455_v18 = vmax.f32 %v312_v40, %v433_v16  ;;  %v435_v19 = vpop.f32.mrb[21].mxu0 }
 0x130   :  { %v576_v20 = vpop.f32.mrb[20].mxu1 }
 0x131   :  { %v618_v21 = vmax.f32 %v611_v17, 0.0  ;;  %v598_v22 = vmax.f32 %v455_v18, %v576_v20  ;;  %v578_v23 = vpop.f32.mrb[21].mxu1 }
 0x132   :  { %v438_v24 = vpop.f32.mrb[22].mxu0 }
 0x133   :  { %626 = vst.msk [vmem:[%s1236_s3 + $0x10] sm:$0xff] %vm623_vm2, %v618_v21  ;;  %v612_v25 = vadd.f32 %v709_v61, %v598_v22  ;;  %v456_v26 = vmax.f32 %v313_v45, %v438_v24  ;;  %v440_v27 = vpop.f32.mrb[23].mxu0 }
 0x134   :  { %v581_v28 = vpop.f32.mrb[22].mxu1 }
 0x135   :  { %v619_v29 = vmax.f32 %v612_v25, 0.0  ;;  %v599_v30 = vmax.f32 %v456_v26, %v581_v28  ;;  %v583_v31 = vpop.f32.mrb[23].mxu1 }
 0x136   :  { %v443_v32 = vpop.f32.mrb[24].mxu0 }
 0x137   :  { %627 = vst.msk [vmem:[%s1236_s3 + $0x18] sm:$0xff] %vm623_vm2, %v619_v29  ;;  %v613_v33 = vadd.f32 %v709_v61, %v599_v30  ;;  %v457_v34 = vmax.f32 %v314_v50, %v443_v32  ;;  %v445_v35 = vpop.f32.mrb[25].mxu0 }
 0x138   :  { %v586_v36 = vpop.f32.mrb[24].mxu1 }
 0x139   :  { %v620_v37 = vmax.f32 %v613_v33, 0.0  ;;  %v600_v38 = vmax.f32 %v457_v34, %v586_v36  ;;  %v588_v39 = vpop.f32.mrb[25].mxu1 }
 0x13a   :  { %v448_v40 = vpop.f32.mrb[26].mxu0 }
 0x13b   :  { %628 = vst.msk [vmem:[%s1236_s3 + $0x20] sm:$0xff] %vm623_vm2, %v620_v37  ;;  %v614_v41 = vadd.f32 %v709_v61, %v600_v38  ;;  %v458_v42 = vmax.f32 %v315_v55, %v448_v40  ;;  %v450_v43 = vpop.f32.mrb[27].mxu0 }
 0x13c   :  { %v591_v44 = vpop.f32.mrb[26].mxu1 }
 0x13d   :  { %v621_v45 = vmax.f32 %v614_v41, 0.0  ;;  %v601_v46 = vmax.f32 %v458_v42, %v591_v44  ;;  %v593_v47 = vpop.f32.mrb[27].mxu1 }
 0x13f   :  { %629 = vst.msk [vmem:[%s1236_s3 + $0x28] sm:$0xff] %vm623_vm2, %v621_v45  ;;  %v615_v48 = vadd.f32 %v709_v61, %v601_v46 }
 0x141   :  { %v622_v49 = vmax.f32 %v615_v48, 0.0 }
 0x143   :  { %630 = vst.msk [vmem:[%s1236_s3 + $0x30] sm:$0xff] %vm623_vm2, %v622_v49 }

</bundles_post_ra>
